<compile_context>
chip_gen: v5e
topology: v5e:2x2
jax: 0.10.0
libtpu: 0.0.40
codegen_flags: <defaults>
</compile_context>

<pallas_src>
import functools
import math

import jax
import jax.numpy as jnp
from jax.experimental import pallas as pl
from jax.experimental.pallas import tpu as pltpu


def _st_joint_att_kernel(x_ref, pool_ref, et_ref, ev_ref,
                         w1_ref, b1_ref, wt_ref, bt_ref, wv_ref, bv_ref,
                         *o_refs, t_len, v_len, fuse_mul):
    f32 = jnp.float32
    x = x_ref[...].astype(f32)                                        # (nb*C, TV)

    # Fused mean-pooling: first T columns = mean over V, last V = mean over T.
    pooled = jnp.dot(x, pool_ref[...], preferred_element_type=f32)    # (nb*C, T+V)

    # fcn: block-diagonal BN-folded 1x1 conv + Hardswish (one wide matmul).
    y = jnp.dot(w1_ref[...], pooled, preferred_element_type=f32) + b1_ref[...]
    y = y * jnp.clip(y + 3.0, 0.0, 6.0) * (1.0 / 6.0)                 # (nb*Cr, T+V)

    # conv_t / conv_v on static lane slices of y, then sigmoid.
    t_att = jax.nn.sigmoid(
        jnp.dot(wt_ref[...], y[:, :t_len], preferred_element_type=f32)
        + bt_ref[...])                                                # (nb*C, T)
    v_att = jax.nn.sigmoid(
        jnp.dot(wv_ref[...], y[:, t_len:t_len + v_len],
                preferred_element_type=f32)
        + bv_ref[...])                                                # (nb*C, V)

    # Outer-product broadcast produced directly in the lane-dense TV layout.
    att = (jnp.dot(t_att, et_ref[...], preferred_element_type=f32) *
           jnp.dot(v_att, ev_ref[...], preferred_element_type=f32))   # (nb*C, TV)

    o_refs[0][...] = att.astype(o_refs[0].dtype)
    if fuse_mul:
        o_refs[1][...] = (att * x).astype(o_refs[1].dtype)


def _vmem_capacity_bytes():
    try:
        cap = int(pltpu.get_tpu_info().vmem_capacity_bytes)
        if cap > 0:
            return cap
    except Exception:
        pass
    return 64 * 1024 * 1024          # conservative: v7x per-TensorCore VMEM


def _num_tensorcores():
    try:
        info = pltpu.get_tpu_info()
        for name in ("num_cores", "core_count", "tensorcores_per_chip"):
            v = getattr(info, name, None)
            if v:
                return int(v)
    except Exception:
        pass
    return 1


def _estimate_vmem_bytes(nb, C, Cr, T, V, x_itemsize, out_itemsize, n_out):
    """Per-step VMEM residency: double-buffered IO + constants + f32 temps."""
    TV, f32 = T * V, 4
    rows = nb * C
    io_tiles = rows * TV * (x_itemsize + n_out * out_itemsize)
    consts = (TV * (T + V) + T * TV + V * TV) * f32                   # pool / expand
    consts += (nb * Cr * nb * C + 2 * nb * C * nb * Cr) * f32         # block-diag W
    consts += (nb * Cr + 2 * nb * C) * f32                            # biases
    interm = (rows * TV * 3                                           # x(f32), 2 expansions
              + 2 * rows * (T + V) + nb * Cr * (T + V)) * f32         # pooled, atts, y
    return 2 * (io_tiles + consts) + interm                           # 2x: double buffer


def _choose_block_batch(N, C, Cr, T, V, x_itemsize, out_itemsize, n_out,
                        budget_bytes, num_cores):
    cap = 1
    for nb in range(1, N + 1):
        if _estimate_vmem_bytes(nb, C, Cr, T, V, x_itemsize, out_itemsize,
                                n_out) <= budget_bytes:
            cap = nb
    nb = cap                                     # mem-bound: fewest grid steps
    # Megacore (v7x-style): keep a whole number of blocks per TensorCore.
    if num_cores > 1 and N > 1:
        steps = max(num_cores, math.ceil(N / cap))
        steps = math.ceil(steps / num_cores) * num_cores
        nb = min(cap, max(1, math.ceil(N / steps)))
    return max(1, nb)


def st_joint_att(x, params, eps=1e-5, return_weighted=False,
                 vmem_budget_bytes=None):
    N, C, T, V = x.shape
    Cr = params["w_fcn"].shape[0]
    TV = T * V
    n_out = 2 if return_weighted else 1

    capacity = _vmem_capacity_bytes()
    budget = vmem_budget_bytes if vmem_budget_bytes is not None else (capacity * 3) // 5
    nb = _choose_block_batch(N, C, Cr, T, V, x.dtype.itemsize, x.dtype.itemsize,
                             n_out, budget, _num_tensorcores())
    steps = math.ceil(N / nb)
    # Multi-step tiling requires the row block to respect the 8-sublane tiling.
    while steps > 1 and (nb * C) % 8 != 0 and nb < N:
        nb += 1
        steps = math.ceil(N / nb)
    n_pad = steps * nb

    # Fold inference-mode BatchNorm into the fcn 1x1 conv.
    scale = params["bn_gamma"] / jnp.sqrt(params["bn_var"] + eps)               # (Cr,)
    w1 = params["w_fcn"] * scale[:, None]                                       # (Cr, C)
    b1 = (params["b_fcn"] - params["bn_mean"]) * scale + params["bn_beta"]      # (Cr,)

    # Constant pooling / expansion matrices (flattened index p = t*V + v).
    p = jnp.arange(TV)
    t_of_p, v_of_p = p // V, p % V
    pool = jnp.concatenate(
        [(t_of_p[:, None] == jnp.arange(T)[None, :]).astype(jnp.float32) / V,
         (v_of_p[:, None] == jnp.arange(V)[None, :]).astype(jnp.float32) / T],
        axis=1)                                                                  # (TV, T+V)
    et = (jnp.arange(T)[:, None] == t_of_p[None, :]).astype(jnp.float32)         # (T, TV)
    ev = (jnp.arange(V)[:, None] == v_of_p[None, :]).astype(jnp.float32)         # (V, TV)

    # Block-diagonal weights so the whole nb-sample block is one matmul chain.
    eye = jnp.eye(nb, dtype=jnp.float32)
    w1_bd = jnp.kron(eye, w1)                                                    # (nb*Cr, nb*C)
    wt_bd = jnp.kron(eye, params["w_t"])                                         # (nb*C, nb*Cr)
    wv_bd = jnp.kron(eye, params["w_v"])                                         # (nb*C, nb*Cr)
    b1_bd = jnp.tile(b1, nb)[:, None]
    bt_bd = jnp.tile(params["b_t"], nb)[:, None]
    bv_bd = jnp.tile(params["b_v"], nb)[:, None]

    # Lane-dense slab; pad the batch so awkward N never collapses to nb=1.
    x2 = x.reshape(N * C, TV)
    if n_pad != N:
        x2 = jnp.concatenate(
            [x2, jnp.zeros(((n_pad - N) * C, TV), x2.dtype)], axis=0)

    rows_blk = nb * C
    vmem_limit = int(min(capacity,
                         max(32 * 1024 * 1024,
                             _estimate_vmem_bytes(nb, C, Cr, T, V,
                                                  x.dtype.itemsize,
                                                  x.dtype.itemsize, n_out)
                             * 3 // 2 + (2 << 20))))

    if return_weighted:
        out_shape = (jax.ShapeDtypeStruct((n_pad * C, TV), x.dtype),
                     jax.ShapeDtypeStruct((n_pad * C, TV), x.dtype))
        out_specs = (pl.BlockSpec((rows_blk, TV), lambda i: (i, 0)),
                     pl.BlockSpec((rows_blk, TV), lambda i: (i, 0)))
    else:
        out_shape = jax.ShapeDtypeStruct((n_pad * C, TV), x.dtype)
        out_specs = pl.BlockSpec((rows_blk, TV), lambda i: (i, 0))

    const_spec = lambda r, c: pl.BlockSpec((r, c), lambda i: (0, 0))
    kernel = functools.partial(_st_joint_att_kernel, t_len=T, v_len=V,
                               fuse_mul=return_weighted)

    res = pl.pallas_call(
        kernel,
        out_shape=out_shape,
        grid_spec=pltpu.PrefetchScalarGridSpec(
            num_scalar_prefetch=0,
            grid=(steps,),
            in_specs=[
                pl.BlockSpec((rows_blk, TV), lambda i: (i, 0)),   # x (lane-dense slab)
                const_spec(TV, T + V),                            # fused pooling matrix
                const_spec(T, TV),                                # t expansion matrix
                const_spec(V, TV),                                # v expansion matrix
                const_spec(nb * Cr, nb * C),                      # block-diag fcn W (BN folded)
                const_spec(nb * Cr, 1),                           # fcn bias
                const_spec(nb * C, nb * Cr),                      # block-diag conv_t W
                const_spec(nb * C, 1),                            # conv_t bias
                const_spec(nb * C, nb * Cr),                      # block-diag conv_v W
                const_spec(nb * C, 1),                            # conv_v bias
            ],
            out_specs=out_specs,
        ),
        compiler_params=pltpu.CompilerParams(
            dimension_semantics=("parallel",),
            vmem_limit_bytes=vmem_limit),
    )(x2, pool, et, ev, w1_bd, b1_bd, wt_bd, bt_bd, wv_bd, bv_bd)

    if return_weighted:
        att = res[0][:N * C].reshape(N, C, T, V)
        xw = res[1][:N * C].reshape(N, C, T, V)
        return att, xw
    return res[:N * C].reshape(N, C, T, V)


def st_joint_att_ref(x, params, eps=1e-5):
    """Plain-JAX reference mirroring the PyTorch forward (BN in eval mode)."""
    N, C, T, V = x.shape
    x_t = jnp.mean(x, axis=3, keepdims=True)                               # (N,C,T,1)
    x_v = jnp.transpose(jnp.mean(x, axis=2, keepdims=True), (0, 1, 3, 2))  # (N,C,V,1)
    cat = jnp.concatenate([x_t, x_v], axis=2)                              # (N,C,T+V,1)
    y = jnp.einsum('oc,nctv->notv', params["w_fcn"], cat) \
        + params["b_fcn"][None, :, None, None]
    scale = params["bn_gamma"] / jnp.sqrt(params["bn_var"] + eps)
    y = (y - params["bn_mean"][None, :, None, None]) * scale[None, :, None, None] \
        + params["bn_beta"][None, :, None, None]
    y = y * jnp.clip(y + 3.0, 0.0, 6.0) / 6.0                              # hardswish
    y_t, y_v = y[:, :, :T], y[:, :, T:]
    t_att = jax.nn.sigmoid(
        jnp.einsum('oc,nctv->notv', params["w_t"], y_t)
        + params["b_t"][None, :, None, None])                              # (N,C,T,1)
    v_in = jnp.transpose(y_v, (0, 1, 3, 2))                                # (N,Cr,1,V)
    v_att = jax.nn.sigmoid(
        jnp.einsum('oc,nctv->notv', params["w_v"], v_in)
        + params["b_v"][None, :, None, None])                              # (N,C,1,V)
    return t_att * v_att


def make_params(key, channel, reduct_ratio=4):
    inner = channel // reduct_ratio
    ks = jax.random.split(key, 10)
    return {
        "w_fcn": jax.random.normal(ks[0], (inner, channel), jnp.float32) * 0.2,
        "b_fcn": jax.random.normal(ks[1], (inner,), jnp.float32) * 0.1,
        "bn_gamma": 0.5 + jax.random.uniform(ks[2], (inner,), jnp.float32),
        "bn_beta": jax.random.normal(ks[3], (inner,), jnp.float32) * 0.1,
        "bn_mean": jax.random.normal(ks[4], (inner,), jnp.float32) * 0.1,
        "bn_var": 0.5 + jax.random.uniform(ks[5], (inner,), jnp.float32),
        "w_t": jax.random.normal(ks[6], (channel, inner), jnp.float32) * 0.2,
        "b_t": jax.random.normal(ks[7], (channel,), jnp.float32) * 0.1,
        "w_v": jax.random.normal(ks[8], (channel, inner), jnp.float32) * 0.2,
        "b_v": jax.random.normal(ks[9], (channel,), jnp.float32) * 0.1,
    }


if __name__ == "__main__":
    N, C, T, V = 8, 16, 16, 16          # batch, channels, frames, joints
    key = jax.random.PRNGKey(0)
    kx, kp = jax.random.split(key)
    x = jax.random.normal(kx, (N, C, T, V), jnp.float32)
    params = make_params(kp, C, reduct_ratio=4)

    att = jax.block_until_ready(st_joint_att(x, params))
    ref = st_joint_att_ref(x, params)
    assert att.shape == (N, C, T, V)
    err = float(jnp.max(jnp.abs(att - ref)))
    assert jnp.allclose(att, ref, atol=1e-4, rtol=1e-4), f"max abs err {err}"

    # Fused variant: additionally emit x * att (saves re-reading x downstream).
    att2, xw = st_joint_att(x, params, return_weighted=True)
    jax.block_until_ready(xw)
    err2 = float(jnp.max(jnp.abs(xw - x * ref)))
    assert jnp.allclose(att2, ref, atol=1e-4, rtol=1e-4)
    assert jnp.allclose(xw, x * ref, atol=1e-4, rtol=1e-4), f"max abs err {err2}"

    print("KERNEL_OK")
</pallas_src>

<mosaic_0001>
module attributes {stable_mosaic.version = 11 : i64} {
  func.func @_st_joint_att_kernel(%arg0: i32, %arg1: memref<128x256xf32, #tpu.memory_space<vmem>>, %arg2: memref<256x32xf32, #tpu.memory_space<vmem>>, %arg3: memref<16x256xf32, #tpu.memory_space<vmem>>, %arg4: memref<16x256xf32, #tpu.memory_space<vmem>>, %arg5: memref<32x128xf32, #tpu.memory_space<vmem>>, %arg6: memref<32x1xf32, #tpu.memory_space<vmem>>, %arg7: memref<128x32xf32, #tpu.memory_space<vmem>>, %arg8: memref<128x1xf32, #tpu.memory_space<vmem>>, %arg9: memref<128x32xf32, #tpu.memory_space<vmem>>, %arg10: memref<128x1xf32, #tpu.memory_space<vmem>>, %arg11: memref<128x256xf32, #tpu.memory_space<vmem>>) attributes {dimension_semantics = [#tpu.dimension_semantics<parallel>], iteration_bounds = array<i64: 1>, scalar_prefetch = 0 : i64, scratch_operands = 0 : i64, tpu.core_type = #tpu.core_type<tc>, window_params = [{transform_indices = @transform_0, window_bounds = array<i64: 128, 256>}, {pipeline_mode = #tpu.pipeline_mode<synchronous>, transform_indices = @transform_1, window_bounds = array<i64: 256, 32>}, {pipeline_mode = #tpu.pipeline_mode<synchronous>, transform_indices = @transform_2, window_bounds = array<i64: 16, 256>}, {pipeline_mode = #tpu.pipeline_mode<synchronous>, transform_indices = @transform_3, window_bounds = array<i64: 16, 256>}, {pipeline_mode = #tpu.pipeline_mode<synchronous>, transform_indices = @transform_4, window_bounds = array<i64: 32, 128>}, {pipeline_mode = #tpu.pipeline_mode<synchronous>, transform_indices = @transform_5, window_bounds = array<i64: 32, 1>}, {pipeline_mode = #tpu.pipeline_mode<synchronous>, transform_indices = @transform_6, window_bounds = array<i64: 128, 32>}, {pipeline_mode = #tpu.pipeline_mode<synchronous>, transform_indices = @transform_7, window_bounds = array<i64: 128, 1>}, {pipeline_mode = #tpu.pipeline_mode<synchronous>, transform_indices = @transform_8, window_bounds = array<i64: 128, 32>}, {pipeline_mode = #tpu.pipeline_mode<synchronous>, transform_indices = @transform_9, window_bounds = array<i64: 128, 1>}, {transform_indices = @transform_10, window_bounds = array<i64: 128, 256>}]} {
    %c0 = arith.constant 0 : index
    %c0_0 = arith.constant 0 : index
    %0 = vector.load %arg1[%c0, %c0_0] : memref<128x256xf32, #tpu.memory_space<vmem>>, vector<128x256xf32>
    %c0_1 = arith.constant 0 : index
    %c0_2 = arith.constant 0 : index
    %1 = vector.load %arg2[%c0_1, %c0_2] : memref<256x32xf32, #tpu.memory_space<vmem>>, vector<256x32xf32>
    %cst = arith.constant dense<0.000000e+00> : vector<128x32xf32>
    %2 = tpu.matmul %0, %1, %cst {dimension_numbers = #tpu.dot_dimension_numbers<[1], [0], [0], [1], [0, 0, 1, 1], [], []>} : vector<128x256xf32>, vector<256x32xf32>, vector<128x32xf32> -> vector<128x32xf32>
    %c0_3 = arith.constant 0 : index
    %c0_4 = arith.constant 0 : index
    %3 = vector.load %arg5[%c0_3, %c0_4] : memref<32x128xf32, #tpu.memory_space<vmem>>, vector<32x128xf32>
    %cst_5 = arith.constant dense<0.000000e+00> : vector<32x32xf32>
    %4 = tpu.matmul %3, %2, %cst_5 {dimension_numbers = #tpu.dot_dimension_numbers<[1], [0], [0], [1], [0, 0, 1, 1], [], []>} : vector<32x128xf32>, vector<128x32xf32>, vector<32x32xf32> -> vector<32x32xf32>
    %c0_6 = arith.constant 0 : index
    %c0_7 = arith.constant 0 : index
    %5 = vector.load %arg6[%c0_6, %c0_7] : memref<32x1xf32, #tpu.memory_space<vmem>>, vector<32x1xf32>
    %6 = vector.broadcast %5 : vector<32x1xf32> to vector<32x32xf32>
    %7 = arith.addf %4, %6 : vector<32x32xf32>
    %cst_8 = arith.constant 3.000000e+00 : f32
    %8 = vector.broadcast %cst_8 : f32 to vector<32x32xf32>
    %9 = arith.addf %7, %8 : vector<32x32xf32>
    %cst_9 = arith.constant 0.000000e+00 : f32
    %cst_10 = arith.constant 6.000000e+00 : f32
    %10 = vector.broadcast %cst_9 : f32 to vector<32x32xf32>
    %11 = arith.maximumf %10, %9 : vector<32x32xf32>
    %12 = vector.broadcast %cst_10 : f32 to vector<32x32xf32>
    %13 = arith.minimumf %12, %11 : vector<32x32xf32>
    %14 = arith.mulf %7, %13 : vector<32x32xf32>
    %cst_11 = arith.constant 0.166666672 : f32
    %15 = vector.broadcast %cst_11 : f32 to vector<32x32xf32>
    %16 = arith.mulf %14, %15 : vector<32x32xf32>
    %c0_12 = arith.constant 0 : index
    %c0_13 = arith.constant 0 : index
    %17 = vector.load %arg7[%c0_12, %c0_13] : memref<128x32xf32, #tpu.memory_space<vmem>>, vector<128x32xf32>
    %18 = vector.extract_strided_slice %16 {offsets = [0, 0], sizes = [32, 16], strides = [1, 1]} : vector<32x32xf32> to vector<32x16xf32>
    %cst_14 = arith.constant dense<0.000000e+00> : vector<128x16xf32>
    %19 = tpu.matmul %17, %18, %cst_14 {dimension_numbers = #tpu.dot_dimension_numbers<[1], [0], [0], [1], [0, 0, 1, 1], [], []>} : vector<128x32xf32>, vector<32x16xf32>, vector<128x16xf32> -> vector<128x16xf32>
    %c0_15 = arith.constant 0 : index
    %c0_16 = arith.constant 0 : index
    %20 = vector.load %arg8[%c0_15, %c0_16] : memref<128x1xf32, #tpu.memory_space<vmem>>, vector<128x1xf32>
    %21 = vector.broadcast %20 : vector<128x1xf32> to vector<128x16xf32>
    %22 = arith.addf %19, %21 : vector<128x16xf32>
    %23 = arith.negf %22 : vector<128x16xf32>
    %24 = math.exp %23 : vector<128x16xf32>
    %cst_17 = arith.constant 1.000000e+00 : f32
    %25 = vector.broadcast %cst_17 : f32 to vector<128x16xf32>
    %26 = arith.addf %25, %24 : vector<128x16xf32>
    %27 = arith.divf %25, %26 : vector<128x16xf32>
    %c0_18 = arith.constant 0 : index
    %c0_19 = arith.constant 0 : index
    %28 = vector.load %arg9[%c0_18, %c0_19] : memref<128x32xf32, #tpu.memory_space<vmem>>, vector<128x32xf32>
    %29 = vector.extract_strided_slice %16 {offsets = [0, 16], sizes = [32, 16], strides = [1, 1]} : vector<32x32xf32> to vector<32x16xf32>
    %cst_20 = arith.constant dense<0.000000e+00> : vector<128x16xf32>
    %30 = tpu.matmul %28, %29, %cst_20 {dimension_numbers = #tpu.dot_dimension_numbers<[1], [0], [0], [1], [0, 0, 1, 1], [], []>} : vector<128x32xf32>, vector<32x16xf32>, vector<128x16xf32> -> vector<128x16xf32>
    %c0_21 = arith.constant 0 : index
    %c0_22 = arith.constant 0 : index
    %31 = vector.load %arg10[%c0_21, %c0_22] : memref<128x1xf32, #tpu.memory_space<vmem>>, vector<128x1xf32>
    %32 = vector.broadcast %31 : vector<128x1xf32> to vector<128x16xf32>
    %33 = arith.addf %30, %32 : vector<128x16xf32>
    %34 = arith.negf %33 : vector<128x16xf32>
    %35 = math.exp %34 : vector<128x16xf32>
    %cst_23 = arith.constant 1.000000e+00 : f32
    %36 = vector.broadcast %cst_23 : f32 to vector<128x16xf32>
    %37 = arith.addf %36, %35 : vector<128x16xf32>
    %38 = arith.divf %36, %37 : vector<128x16xf32>
    %c0_24 = arith.constant 0 : index
    %c0_25 = arith.constant 0 : index
    %39 = vector.load %arg3[%c0_24, %c0_25] : memref<16x256xf32, #tpu.memory_space<vmem>>, vector<16x256xf32>
    %cst_26 = arith.constant dense<0.000000e+00> : vector<128x256xf32>
    %40 = tpu.matmul %27, %39, %cst_26 {dimension_numbers = #tpu.dot_dimension_numbers<[1], [0], [0], [1], [0, 0, 1, 1], [], []>} : vector<128x16xf32>, vector<16x256xf32>, vector<128x256xf32> -> vector<128x256xf32>
    %c0_27 = arith.constant 0 : index
    %c0_28 = arith.constant 0 : index
    %41 = vector.load %arg4[%c0_27, %c0_28] : memref<16x256xf32, #tpu.memory_space<vmem>>, vector<16x256xf32>
    %cst_29 = arith.constant dense<0.000000e+00> : vector<128x256xf32>
    %42 = tpu.matmul %38, %41, %cst_29 {dimension_numbers = #tpu.dot_dimension_numbers<[1], [0], [0], [1], [0, 0, 1, 1], [], []>} : vector<128x16xf32>, vector<16x256xf32>, vector<128x256xf32> -> vector<128x256xf32>
    %43 = arith.mulf %40, %42 : vector<128x256xf32>
    %c0_30 = arith.constant 0 : index
    %c0_31 = arith.constant 0 : index
    %44 = vector.load %arg11[%c0_30, %c0_31] : memref<128x256xf32, #tpu.memory_space<vmem>>, vector<128x256xf32>
    tpu.vector_store %arg11[%c0_30, %c0_31], %43 {strides = array<i32>} : memref<128x256xf32, #tpu.memory_space<vmem>>, vector<128x256xf32>,
    return
  }
  func.func @transform_0(%arg0: i32) -> (i32, i32) {
    %c0_i32 = arith.constant 0 : i32
    %c0_i32_0 = arith.constant 0 : i32
    return %arg0, %c0_i32 : i32, i32
  }
  func.func @transform_1(%arg0: i32) -> (i32, i32) {
    %c0_i32 = arith.constant 0 : i32
    %c0_i32_0 = arith.constant 0 : i32
    %c0_i32_1 = arith.constant 0 : i32
    return %c0_i32, %c0_i32_0 : i32, i32
  }
  func.func @transform_2(%arg0: i32) -> (i32, i32) {
    %c0_i32 = arith.constant 0 : i32
    %c0_i32_0 = arith.constant 0 : i32
    %c0_i32_1 = arith.constant 0 : i32
    return %c0_i32, %c0_i32_0 : i32, i32
  }
  func.func @transform_3(%arg0: i32) -> (i32, i32) {
    %c0_i32 = arith.constant 0 : i32
    %c0_i32_0 = arith.constant 0 : i32
    %c0_i32_1 = arith.constant 0 : i32
    return %c0_i32, %c0_i32_0 : i32, i32
  }
  func.func @transform_4(%arg0: i32) -> (i32, i32) {
    %c0_i32 = arith.constant 0 : i32
    %c0_i32_0 = arith.constant 0 : i32
    %c0_i32_1 = arith.constant 0 : i32
    return %c0_i32, %c0_i32_0 : i32, i32
  }
  func.func @transform_5(%arg0: i32) -> (i32, i32) {
    %c0_i32 = arith.constant 0 : i32
    %c0_i32_0 = arith.constant 0 : i32
    %c0_i32_1 = arith.constant 0 : i32
    return %c0_i32, %c0_i32_0 : i32, i32
  }
  func.func @transform_6(%arg0: i32) -> (i32, i32) {
    %c0_i32 = arith.constant 0 : i32
    %c0_i32_0 = arith.constant 0 : i32
    %c0_i32_1 = arith.constant 0 : i32
    return %c0_i32, %c0_i32_0 : i32, i32
  }
  func.func @transform_7(%arg0: i32) -> (i32, i32) {
    %c0_i32 = arith.constant 0 : i32
    %c0_i32_0 = arith.constant 0 : i32
    %c0_i32_1 = arith.constant 0 : i32
    return %c0_i32, %c0_i32_0 : i32, i32
  }
  func.func @transform_8(%arg0: i32) -> (i32, i32) {
    %c0_i32 = arith.constant 0 : i32
    %c0_i32_0 = arith.constant 0 : i32
    %c0_i32_1 = arith.constant 0 : i32
    return %c0_i32, %c0_i32_0 : i32, i32
  }
  func.func @transform_9(%arg0: i32) -> (i32, i32) {
    %c0_i32 = arith.constant 0 : i32
    %c0_i32_0 = arith.constant 0 : i32
    %c0_i32_1 = arith.constant 0 : i32
    return %c0_i32, %c0_i32_0 : i32, i32
  }
  func.func @transform_10(%arg0: i32) -> (i32, i32) {
    %c0_i32 = arith.constant 0 : i32
    %c0_i32_0 = arith.constant 0 : i32
    return %arg0, %c0_i32 : i32, i32
  }
}

</mosaic_0001>

<bundles_post_ra>
// kernel: tpu_custom_call.1
= control target key start
LH: loop header
LB: loop body
LE: loop exit
PB: predicated region body
PF: predicated region fallthrough
CT: control target
= control target key end

     0   :  { %s2947_s0 = inlined_call_operand.vmem [shape: f32[128,256], index: 0, kind: input, shape index: {}]   ;;  %s2948_s1 = inlined_call_operand.vmem [shape: f32[256,32], index: 1, kind: input, shape index: {}]   ;;  %s2949_s2 = inlined_call_operand.vmem [shape: f32[16,256], index: 2, kind: input, shape index: {}]   ;;  %s2950_s3 = inlined_call_operand.vmem [shape: f32[16,256], index: 3, kind: input, shape index: {}]   ;;  %s2951_s4 = inlined_call_operand.vmem [shape: f32[32,128], index: 4, kind: input, shape index: {}]   ;;  %s2952_s5 = inlined_call_operand.vmem [shape: f32[32,1], index: 5, kind: input, shape index: {}]   ;;  %s2953_s6 = inlined_call_operand.vmem [shape: f32[128,32], index: 6, kind: input, shape index: {}]   ;;  %s2954_s7 = inlined_call_operand.vmem [shape: f32[128,1], index: 7, kind: input, shape index: {}]   ;;  %s2955_s8 = inlined_call_operand.vmem [shape: f32[128,32], index: 8, kind: input, shape index: {}]   ;;  %s2956_s9 = inlined_call_operand.vmem [shape: f32[128,1], index: 9, kind: input, shape index: {}]   ;;  %s2957_s10 = inlined_call_operand.hbm [shape: f32[128,256], index: 10, kind: output, shape index: {}]  }
   0x1   :  { %v83_v0 = vld [vmem:[%s2948_s1 + $0x78] sm:$0xff]  ;;  %v82_v2 = vld [vmem:[%s2948_s1 + $0x70] sm:$0xff]  ;;  %v81_v4 = vld [vmem:[%s2948_s1 + $0x68] sm:$0xff] }
   0x2   :  { %v99_v1 = vld [vmem:[%s2948_s1 + $0xf8] sm:$0xff]  ;;  %100 = vmatpush.msra.mxu0 %v83_v0  ;;  %v98_v3 = vld [vmem:[%s2948_s1 + $0xf0] sm:$0xff]  ;;  %v97_v5 = vld [vmem:[%s2948_s1 + $0xe8] sm:$0xff] }
   0x3   :  { %165 = vmatpush.msra.mxu1 %v99_v1  ;;  %v80_v6 = vld [vmem:[%s2948_s1 + $0x60] sm:$0xff]  ;;  %v79_v8 = vld [vmem:[%s2948_s1 + $0x58] sm:$0xff]  ;;  %v78_v10 = vld [vmem:[%s2948_s1 + $0x50] sm:$0xff] }
   0x4   :  { %101 = vmatpush.msra.mxu0 %v82_v2  ;;  %v96_v7 = vld [vmem:[%s2948_s1 + $0xe0] sm:$0xff]  ;;  %v95_v9 = vld [vmem:[%s2948_s1 + $0xd8] sm:$0xff]  ;;  %v94_v11 = vld [vmem:[%s2948_s1 + $0xd0] sm:$0xff] }
   0x5   :  { %166 = vmatpush.msra.mxu1 %v98_v3  ;;  %v77_v12 = vld [vmem:[%s2948_s1 + $0x48] sm:$0xff]  ;;  %v76_v14 = vld [vmem:[%s2948_s1 + $0x40] sm:$0xff] }
   0x6   :  { %102 = vmatpush.msra.mxu0 %v81_v4  ;;  %v93_v13 = vld [vmem:[%s2948_s1 + $0xc8] sm:$0xff]  ;;  %v92_v15 = vld [vmem:[%s2948_s1 + $0xc0] sm:$0xff] }
   0x7   :  { %167 = vmatpush.msra.mxu1 %v97_v5 }
   0x8   :  { %103 = vmatpush.msra.mxu0 %v80_v6 }
   0x9   :  { %168 = vmatpush.msra.mxu1 %v96_v7 }
   0xa   :  { %104 = vmatpush.msra.mxu0 %v79_v8 }
   0xb   :  { %169 = vmatpush.msra.mxu1 %v95_v9 }
   0xc   :  { %105 = vmatpush.msra.mxu0 %v78_v10 }
   0xd   :  { %170 = vmatpush.msra.mxu1 %v94_v11 }
   0xe   :  { %15 = vsyncpa [#allocation3], 0  ;;  %106 = vmatpush.msra.mxu0 %v77_v12  ;;  %v75_v16 = vld [vmem:[%s2948_s1 + $0x38] sm:$0xff]  ;;  %v74_v18 = vld [vmem:[%s2948_s1 + $0x30] sm:$0xff]  ;;  %vm419_vm0 = vcmask 261120   ;;  %vm1386_vm4 = vcmask 130048  }
   0xf   :  { %171 = vmatpush.msra.mxu1 %v93_v13  ;;  %v91_v17 = vld [vmem:[%s2948_s1 + $0xb8] sm:$0xff]  ;;  %v90_v19 = vld [vmem:[%s2948_s1 + $0xb0] sm:$0xff]  ;;  %v73_v20 = vld [vmem:[%s2948_s1 + $0x28] sm:$0xff]  ;;  %s2136_s30 = smov 256  }
  0x10   :  { %107 = vmatpush.msra.mxu0 %v76_v14  ;;  %v89_v21 = vld [vmem:[%s2948_s1 + $0xa8] sm:$0xff]  ;;  %v72_v22 = vld [vmem:[%s2948_s1 + $0x20] sm:$0xff]  ;;  %v71_v24 = vld [vmem:[%s2948_s1 + $0x18] sm:$0xff] }
  0x11   :  { %172 = vmatpush.msra.mxu1 %v92_v15  ;;  %v88_v23 = vld [vmem:[%s2948_s1 + $0xa0] sm:$0xff]  ;;  %v87_v25 = vld [vmem:[%s2948_s1 + $0x98] sm:$0xff]  ;;  %v70_v26 = vld [vmem:[%s2948_s1 + $0x10] sm:$0xff] }
  0x12   :  { %108 = vmatpush.msra.mxu0 %v75_v16  ;;  %v86_v27 = vld [vmem:[%s2948_s1 + $0x90] sm:$0xff]  ;;  %v69_v28 = vld [vmem:[%s2948_s1 + $0x8] sm:$0xff]  ;;  %v68_v30 = vld [vmem:[%s2948_s1] sm:$0xff] }
  0x13   :  { %173 = vmatpush.msra.mxu1 %v91_v17  ;;  %v85_v29 = vld [vmem:[%s2948_s1 + $0x88] sm:$0xff]  ;;  %v84_v31 = vld [vmem:[%s2948_s1 + $0x80] sm:$0xff]  ;;  %v38_v34 = vld [vmem:[%s2947_s0 + $0x10] sm:$0xff]  ;;  %v2133_v17 = vmov 0  }
  0x14   :  { %109 = vmatpush.msra.mxu0 %v74_v18  ;;  %v36_v32 = vld [vmem:[%s2947_s0] sm:$0xff]  ;;  %v37_v33 = vld [vmem:[%s2947_s0 + $0x8] sm:$0xff]  ;;  %v39_v35 = vld [vmem:[%s2947_s0 + $0x18] sm:$0xff]  ;;  %1966 = vset.pattern.permute.xlu0 %v2133_v17 }
  0x15   :  { %174 = vmatpush.msra.mxu1 %v90_v19  ;;  %v40_v36 = vld [vmem:[%s2947_s0 + $0x20] sm:$0xff]  ;;  %v41_v37 = vld [vmem:[%s2947_s0 + $0x28] sm:$0xff]  ;;  %v42_v38 = vld [vmem:[%s2947_s0 + $0x30] sm:$0xff]  ;;  %1967 = vset.pattern.permute.xlu1 %v2133_v17 }
  0x16   :  { %110 = vmatpush.msra.mxu0 %v73_v20  ;;  %v43_v39 = vld [vmem:[%s2947_s0 + $0x38] sm:$0xff]  ;;  %v44_v40 = vld [vmem:[%s2947_s0 + $0x40] sm:$0xff]  ;;  %v45_v41 = vld [vmem:[%s2947_s0 + $0x48] sm:$0xff]  ;;  %1978 = vset.pattern.permute.xlu2 %v2133_v17 }
  0x17   :  { %175 = vmatpush.msra.mxu1 %v89_v21  ;;  %v46_v42 = vld [vmem:[%s2947_s0 + $0x50] sm:$0xff]  ;;  %v47_v43 = vld [vmem:[%s2947_s0 + $0x58] sm:$0xff]  ;;  %v48_v44 = vld [vmem:[%s2947_s0 + $0x60] sm:$0xff] }
  0x18   :  { %111 = vmatpush.msra.mxu0 %v72_v22  ;;  %v49_v45 = vld [vmem:[%s2947_s0 + $0x68] sm:$0xff]  ;;  %v50_v46 = vld [vmem:[%s2947_s0 + $0x70] sm:$0xff]  ;;  %v51_v47 = vld [vmem:[%s2947_s0 + $0x78] sm:$0xff] }
  0x19   :  { %176 = vmatpush.msra.mxu1 %v88_v23  ;;  %v52_v48 = vld [vmem:[%s2947_s0 + $0x80] sm:$0xff]  ;;  %v53_v49 = vld [vmem:[%s2947_s0 + $0x88] sm:$0xff]  ;;  %v54_v50 = vld [vmem:[%s2947_s0 + $0x90] sm:$0xff] }
  0x1a   :  { %112 = vmatpush.msra.mxu0 %v71_v24  ;;  %v55_v51 = vld [vmem:[%s2947_s0 + $0x98] sm:$0xff]  ;;  %v56_v52 = vld [vmem:[%s2947_s0 + $0xa0] sm:$0xff]  ;;  %v57_v53 = vld [vmem:[%s2947_s0 + $0xa8] sm:$0xff] }
  0x1b   :  { %177 = vmatpush.msra.mxu1 %v87_v25  ;;  %v58_v54 = vld [vmem:[%s2947_s0 + $0xb0] sm:$0xff]  ;;  %v59_v55 = vld [vmem:[%s2947_s0 + $0xb8] sm:$0xff]  ;;  %v60_v56 = vld [vmem:[%s2947_s0 + $0xc0] sm:$0xff] }
  0x1c   :  { %113 = vmatpush.msra.mxu0 %v70_v26  ;;  %v61_v57 = vld [vmem:[%s2947_s0 + $0xc8] sm:$0xff]  ;;  %v62_v58 = vld [vmem:[%s2947_s0 + $0xd0] sm:$0xff]  ;;  %v63_v59 = vld [vmem:[%s2947_s0 + $0xd8] sm:$0xff] }
  0x1d   :  { %178 = vmatpush.msra.mxu1 %v86_v27  ;;  %v64_v60 = vld [vmem:[%s2947_s0 + $0xe0] sm:$0xff]  ;;  %v65_v61 = vld [vmem:[%s2947_s0 + $0xe8] sm:$0xff]  ;;  %v66_v62 = vld [vmem:[%s2947_s0 + $0xf0] sm:$0xff] }
  0x1e   :  { %114 = vmatpush.msra.mxu0 %v69_v28  ;;  %v67_v63 = vld [vmem:[%s2947_s0 + $0xf8] sm:$0xff]  ;;  %v236_v21 = vld [vmem:[%s2952_s5 + $0x10] sm:$0xff]  ;;  %v235_v22 = vld [vmem:[%s2952_s5 + $0x8] sm:$0xff] }
  0x1f   :  { %179 = vmatpush.msra.mxu1 %v85_v29  ;;  %v237_v16 = vld [vmem:[%s2952_s5 + $0x18] sm:$0xff]  ;;  %245 = vperm.xlu1 %1967, %v235_v22   ;;  %v323_v25 = vld [vmem:[%s2954_s7] sm:$0xff]  ;;  %v854_v29 = vld [vmem:[%s2956_s9 + $0x8] sm:$0xff] }
  0x20   :  { %115 = vmatpush.msra.mxu0 %v68_v30  ;;  %255 = vperm.xlu0 %1966, %v237_v16   ;;  %v234_v26 = vld [vmem:[%s2952_s5] sm:$0xff]  ;;  %v866_v17 = vld [vmem:[%s2956_s9 + $0x68] sm:$0xff] }
  0x21   :  { %180 = vmatpush.msra.mxu1 %v84_v31  ;;  %116 = vmatmul.f32.vlgmr.msra.gmra.mxu0 %v36_v32  ;;  %v853_v30 = vld [vmem:[%s2956_s9] sm:$0xff] }
  0x22   :  { %181 = vmatmul.f32.vlgmr.msra.gmra.mxu1 %v37_v33  ;;  %v326_v33 = vld [vmem:[%s2954_s7 + $0x18] sm:$0xff] }
  0x27   :  { %240 = vperm.xlu1 %1967, %v234_v26  }
  0x28   :  { %250 = vperm.xlu0 %1966, %v236_v21  }
  0x29   :  { %119 = vmatmul.f32.gmra.mxu0 %v38_v34  ;;  %v325_v34 = vld [vmem:[%s2954_s7 + $0x10] sm:$0xff] }
  0x2a   :  { %184 = vmatmul.f32.gmra.mxu1 %v39_v35 }
  0x2f   :  { %871 = vperm.xlu1 %1967, %v853_v30  }
  0x30   :  { %341 = vperm.xlu0 %1966, %v323_v25  }
  0x31   :  { %122 = vmatmul.f32.gmra.mxu0 %v40_v36 }
  0x32   :  { %187 = vmatmul.f32.gmra.mxu1 %v41_v37  ;;  %v857_v37 = vld [vmem:[%s2956_s9 + $0x20] sm:$0xff] }
  0x37   :  { %351 = vperm.xlu1 %1967, %v325_v34  }
  0x38   :  { %876 = vperm.xlu0 %1966, %v854_v29  }
  0x39   :  { %125 = vmatmul.f32.gmra.mxu0 %v42_v38  ;;  %v856_v38 = vld [vmem:[%s2956_s9 + $0x18] sm:$0xff] }
  0x3a   :  { %190 = vmatmul.f32.gmra.mxu1 %v43_v39 }
  0x3f   :  { %886 = vperm.xlu1 %1967, %v856_v38  }
  0x40   :  { %356 = vperm.xlu0 %1966, %v326_v33  }
  0x41   :  { %128 = vmatmul.f32.gmra.mxu0 %v44_v40 }
  0x42   :  { %193 = vmatmul.f32.gmra.mxu1 %v45_v41  ;;  %v329_v41 = vld [vmem:[%s2954_s7 + $0x30] sm:$0xff] }
  0x48   :  { %891 = vperm.xlu0 %1966, %v857_v37  }
  0x49   :  { %131 = vmatmul.f32.gmra.mxu0 %v46_v42  ;;  %v328_v42 = vld [vmem:[%s2954_s7 + $0x28] sm:$0xff] }
  0x4a   :  { %196 = vmatmul.f32.gmra.mxu1 %v47_v43  ;;  %366 = vperm.xlu1 %1967, %v328_v42  }
  0x50   :  { %371 = vperm.xlu0 %1966, %v329_v41  }
  0x51   :  { %134 = vmatmul.f32.gmra.mxu0 %v48_v44 }
  0x52   :  { %199 = vmatmul.f32.gmra.mxu1 %v49_v45  ;;  %v860_v45 = vld [vmem:[%s2956_s9 + $0x38] sm:$0xff] }
  0x58   :  { %906 = vperm.xlu0 %1966, %v860_v45  }
  0x59   :  { %137 = vmatmul.f32.gmra.mxu0 %v50_v46  ;;  %v859_v46 = vld [vmem:[%s2956_s9 + $0x30] sm:$0xff] }
  0x5a   :  { %202 = vmatmul.f32.gmra.mxu1 %v51_v47  ;;  %901 = vperm.xlu1 %1967, %v859_v46  }
  0x61   :  { %140 = vmatmul.f32.gmra.mxu0 %v52_v48 }
  0x62   :  { %205 = vmatmul.f32.gmra.mxu1 %v53_v49 }
  0x69   :  { %143 = vmatmul.f32.gmra.mxu0 %v54_v50  ;;  %v332_v50 = vld [vmem:[%s2954_s7 + $0x48] sm:$0xff] }
  0x6a   :  { %208 = vmatmul.f32.gmra.mxu1 %v55_v51  ;;  %v331_v51 = vld [vmem:[%s2954_s7 + $0x40] sm:$0xff]  ;;  %386 = vperm.xlu0 %1966, %v332_v50   ;;  %v308_v50 = vld [vmem:[%s2953_s6 + $0x8] sm:$0xff] }
  0x6b   :  { %381 = vperm.xlu1 %1967, %v331_v51   ;;  %v309_v51 = vld [vmem:[%s2953_s6 + $0x10] sm:$0xff] }
  0x71   :  { %146 = vmatmul.f32.gmra.mxu0 %v56_v52 }
  0x72   :  { %211 = vmatmul.f32.gmra.mxu1 %v57_v53 }
  0x79   :  { %149 = vmatmul.f32.gmra.mxu0 %v58_v54 }
  0x7a   :  { %214 = vmatmul.f32.gmra.mxu1 %v59_v55 }
  0x81   :  { %152 = vmatmul.f32.gmra.mxu0 %v60_v56  ;;  %v863_v56 = vld [vmem:[%s2956_s9 + $0x50] sm:$0xff] }
  0x82   :  { %217 = vmatmul.f32.gmra.mxu1 %v61_v57  ;;  %v862_v57 = vld [vmem:[%s2956_s9 + $0x48] sm:$0xff]  ;;  %921 = vperm.xlu0 %1966, %v863_v56  }
  0x83   :  { %916 = vperm.xlu1 %1967, %v862_v57   ;;  %v312_v56 = vld [vmem:[%s2953_s6 + $0x28] sm:$0xff]  ;;  %v327_v57 = vld [vmem:[%s2954_s7 + $0x20] sm:$0xff] }
  0x89   :  { %155 = vmatmul.f32.gmra.mxu0 %v62_v58 }
  0x8a   :  { %220 = vmatmul.f32.gmra.mxu1 %v63_v59 }
  0x91   :  { %158 = vmatmul.f32.gmra.mxu0 %v64_v60 }
  0x92   :  { %223 = vmatmul.f32.gmra.mxu1 %v65_v61  ;;  %v335_v61 = vld [vmem:[%s2954_s7 + $0x60] sm:$0xff] }
  0x93   :  { %401 = vperm.xlu0 %1966, %v335_v61   ;;  %v315_v61 = vld [vmem:[%s2953_s6 + $0x40] sm:$0xff] }
  0x99   :  { %161 = vmatmul.f32.gmra.mxu0 %v66_v62  ;;  %v334_v62 = vld [vmem:[%s2954_s7 + $0x58] sm:$0xff] }
  0x9a   :  { %226 = vmatmul.f32.gmra.mxu1 %v67_v63  ;;  %396 = vperm.xlu1 %1967, %v334_v62   ;;  %v330_v62 = vld [vmem:[%s2954_s7 + $0x38] sm:$0xff] }
  0x9b   :  { %936 = vperm.xlu0 %1966, %v866_v17   ;;  %v318_v17 = vld [vmem:[%s2953_s6 + $0x58] sm:$0xff] }
  0x9e   :  { %v2385_v0 = vpop.f32.mrf.mxu0 }
  0x9f   :  { %v2387_v1 = vpop.f32.mrf.mxu1 }
  0xa6   :  { %v2389_v2 = vpop.f32.mrf.mxu0 }
  0xa7   :  { %v2391_v3 = vpop.f32.mrf.mxu1 }
  0xae   :  { %v2393_v4 = vpop.f32.mrf.mxu0 }
  0xaf   :  { %v2395_v5 = vpop.f32.mrf.mxu1 }
  0xb6   :  { %v2397_v6 = vpop.f32.mrf.mxu0 }
  0xb7   :  { %v2399_v7 = vpop.f32.mrf.mxu1 }
  0xbe   :  { %v2401_v8 = vpop.f32.mrf.mxu0 }
  0xbf   :  { %v2403_v9 = vpop.f32.mrf.mxu1 }
  0xc6   :  { %v2405_v10 = vpop.f32.mrf.mxu0 }
  0xc7   :  { %v2407_v11 = vpop.f32.mrf.mxu1 }
  0xc8   :  { %v198_v16 = vadd.f32 %v2407_v11, %v2405_v10  ;;  %v189_v10 = vadd.f32 %v2395_v5, %v2393_v4  ;;  %v337_v4 = vld [vmem:[%s2954_s7 + $0x70] sm:$0xff]  ;;  %v256_v11 = vpop.permute.xlu0 %255 }
  0xce   :  { %v2409_v12 = vpop.f32.mrf.mxu0 }
  0xcf   :  { %v2411_v13 = vpop.f32.mrf.mxu1 }
  0xd0   :  { %v201_v63 = vadd.f32 %v2411_v13, %v2409_v12  ;;  %v865_v12 = vld [vmem:[%s2956_s9 + $0x60] sm:$0xff] }
  0xd1   :  { %931 = vperm.xlu1 %1967, %v865_v12  }
  0xd6   :  { %v2413_v14 = vpop.f32.mrf.mxu0 }
  0xd7   :  { %v2415_v15 = vpop.f32.mrf.mxu1 }
  0xd8   :  { %v204_v60 = vadd.f32 %v2415_v15, %v2413_v14  ;;  %v195_v14 = vadd.f32 %v2403_v9, %v2401_v8  ;;  %v192_v15 = vadd.f32 %v2399_v7, %v2397_v6  ;;  %v186_v8 = vadd.f32 %v2391_v3, %v2389_v2  ;;  %v230_v7 = vld [vmem:[%s2951_s4] sm:$0xff]  ;;  %v338_v9 = vld [vmem:[%s2954_s7 + $0x78] sm:$0xff]  ;;  %v232_v2 = vld [vmem:[%s2951_s4 + $0x10] sm:$0xff] }
  0xd9   :  { %v183_v6 = vadd.f32 %v2387_v1, %v2385_v0  ;;  %416 = vperm.xlu0 %1966, %v338_v9   ;;  %411 = vperm.xlu1 %1967, %v337_v4   ;;  %v231_v0 = vld [vmem:[%s2951_s4 + $0x8] sm:$0xff]  ;;  %v868_v1 = vld [vmem:[%s2956_s9 + $0x78] sm:$0xff] }
  0xda   :  { %v233_v3 = vld [vmem:[%s2951_s4 + $0x18] sm:$0xff]  ;;  %s2134_s4 = smov 112  }
  0xde   :  { %v141_v18 = vpop.f32.mrf.mxu0 }
  0xdf   :  { %v206_v19 = vpop.f32.mrf.mxu1 }
  0xe0   :  { %v2420_v20 = vadd.f32 %v206_v19, %v141_v18  ;;  %v246_v18 = vpop.permute.xlu1 %245  ;;  %v251_v19 = vpop.permute.xlu0 %250 }
  0xe1   :  { %946 = vperm.xlu1 %1967, %v868_v1   ;;  %v864_v1 = vld [vmem:[%s2956_s9 + $0x58] sm:$0xff] }
  0xe6   :  { %v144_v23 = vpop.f32.mrf.mxu0 }
  0xe7   :  { %v209_v24 = vpop.f32.mrf.mxu1 }
  0xe8   :  { %v210_v59 = vadd.f32 %v209_v24, %v144_v23  ;;  %v241_v24 = vpop.permute.xlu1 %240 }
  0xee   :  { %v147_v27 = vpop.f32.mrf.mxu0 }
  0xef   :  { %v212_v28 = vpop.f32.mrf.mxu1 }
  0xf0   :  { %v213_v58 = vadd.f32 %v212_v28, %v147_v27 }
  0xf6   :  { %v150_v31 = vpop.f32.mrf.mxu0 }
  0xf7   :  { %v215_v32 = vpop.f32.mrf.mxu1 }
  0xf8   :  { %v216_v55 = vadd.f32 %v215_v32, %v150_v31 }
  0xfe   :  { %v153_v35 = vpop.f32.mrf.mxu0 }
  0xff   :  { %v218_v36 = vpop.f32.mrf.mxu1 }
 0x100   :  { %v219_v54 = vadd.f32 %v218_v36, %v153_v35 }
 0x106   :  { %v156_v39 = vpop.f32.mrf.mxu0 }
 0x107   :  { %v221_v40 = vpop.f32.mrf.mxu1 }
 0x108   :  { %v222_v53 = vadd.f32 %v221_v40, %v156_v39 }
 0x10e   :  { %v159_v43 = vpop.f32.mrf.mxu0 }
 0x10f   :  { %v224_v44 = vpop.f32.mrf.mxu1 }
 0x110   :  { %v225_v52 = vadd.f32 %v224_v44, %v159_v43 }
 0x116   :  { %v162_v47 = vpop.f32.mrf.mxu0 }
 0x117   :  { %v227_v48 = vpop.f32.mrf.mxu1 }
 0x118   :  { %v228_v49 = vadd.f32 %v227_v48, %v162_v47  ;;  %v307_v48 = vld [vmem:[%s2953_s6] sm:$0xff] }
 0x11a   :  { %258 = vmatpush.msra.mxu2 %v228_v49 }
 0x11c   :  { %259 = vmatpush.msra.mxu2 %v225_v52  ;;  %v324_v52 = vld [vmem:[%s2954_s7 + $0x8] sm:$0xff] }
 0x11e   :  { %260 = vmatpush.msra.mxu2 %v222_v53  ;;  %v310_v53 = vld [vmem:[%s2953_s6 + $0x18] sm:$0xff] }
 0x120   :  { %261 = vmatpush.msra.mxu2 %v219_v54  ;;  %v311_v54 = vld [vmem:[%s2953_s6 + $0x20] sm:$0xff] }
 0x122   :  { %262 = vmatpush.msra.mxu2 %v216_v55  ;;  %v855_v55 = vld [vmem:[%s2956_s9 + $0x10] sm:$0xff] }
 0x124   :  { %263 = vmatpush.msra.mxu2 %v213_v58  ;;  %v313_v58 = vld [vmem:[%s2953_s6 + $0x30] sm:$0xff] }
 0x126   :  { %264 = vmatpush.msra.mxu2 %v210_v59  ;;  %v314_v59 = vld [vmem:[%s2953_s6 + $0x38] sm:$0xff] }
 0x128   :  { %265 = vmatpush.msra.mxu2 %v2420_v20 }
 0x12a   :  { %266 = vmatpush.msra.mxu2 %v204_v60  ;;  %v858_v60 = vld [vmem:[%s2956_s9 + $0x28] sm:$0xff] }
 0x12c   :  { %267 = vmatpush.msra.mxu2 %v201_v63  ;;  %v316_v63 = vld [vmem:[%s2953_s6 + $0x48] sm:$0xff] }
 0x12e   :  { %268 = vmatpush.msra.mxu2 %v198_v16  ;;  %v317_v16 = vld [vmem:[%s2953_s6 + $0x50] sm:$0xff] }
 0x130   :  { %269 = vmatpush.msra.mxu2 %v195_v14  ;;  %v861_v14 = vld [vmem:[%s2956_s9 + $0x40] sm:$0xff] }
 0x132   :  { %270 = vmatpush.msra.mxu2 %v192_v15 }
 0x134   :  { %271 = vmatpush.msra.mxu2 %v189_v10 }
 0x136   :  { %272 = vmatpush.msra.mxu2 %v186_v8  ;;  %v333_v8 = vld [vmem:[%s2954_s7 + $0x50] sm:$0xff] }
 0x138   :  { %273 = vmatpush.msra.mxu2 %v183_v6 }
 0x139   :  { %274 = vmatmul.f32.vlgmr.msra.gmra.mxu2 %v230_v7  ;;  %v319_v7 = vld [vmem:[%s2953_s6 + $0x60] sm:$0xff] }
 0x141   :  { %277 = vmatmul.f32.gmra.mxu2 %v231_v0  ;;  %v837_v0 = vld [vmem:[%s2955_s8] sm:$0xff] }
 0x149   :  { %280 = vmatmul.f32.gmra.mxu2 %v232_v2  ;;  %v320_v2 = vld [vmem:[%s2953_s6 + $0x68] sm:$0xff] }
 0x151   :  { %283 = vmatmul.f32.gmra.mxu2 %v233_v3  ;;  %v838_v3 = vld [vmem:[%s2955_s8 + $0x8] sm:$0xff] }
 0x1bc   :  { %v275_v5 = vpop.f32.mrf.mxu2 }
 0x1bd   :  { %v276_v25 = vadd.f32 %v275_v5, %v241_v24  ;;  %v336_v5 = vld [vmem:[%s2954_s7 + $0x68] sm:$0xff]  ;;  %v841_v24 = vld [vmem:[%s2955_s8 + $0x20] sm:$0xff] }
 0x1bf   :  { %v287_v29 = vadd.f32 3.0, %v276_v25 }
 0x1c1   :  { %v291_v34 = vmax.f32 %v287_v29, 0.0 }
 0x1c3   :  { %v295_v40 = vmin.f32 %v291_v34, 6.0 }
 0x1c4   :  { %v278_v13 = vpop.f32.mrf.mxu2 }
 0x1c5   :  { %v279_v22 = vadd.f32 %v278_v13, %v246_v18  ;;  %v299_v45 = vmul.f32 %v295_v40, %v276_v25  ;;  %v839_v13 = vld [vmem:[%s2955_s8 + $0x10] sm:$0xff]  ;;  %v1382_v25 = vld [vmem:[%s2949_s2] sm:$0xff] }
 0x1c6   :  { %v867_v18 = vld [vmem:[%s2956_s9 + $0x70] sm:$0xff] }
 0x1c7   :  { %v288_v26 = vadd.f32 3.0, %v279_v22  ;;  %v303_v47 = vmul.f32 0.16666667, %v299_v45 }
 0x1c9   :  { %v292_v31 = vmax.f32 %v288_v26, 0.0  ;;  %v1383_v26 = vld [vmem:[%s2949_s2 + $0x8] sm:$0xff] }
 0x1cb   :  { %v296_v38 = vmin.f32 %v292_v31, 6.0 }
 0x1cc   :  { %v281_v20 = vpop.f32.mrf.mxu2 }
 0x1cd   :  { %v282_v21 = vadd.f32 %v281_v20, %v251_v19  ;;  %v300_v43 = vmul.f32 %v296_v38, %v279_v22  ;;  %v322_v19 = vld [vmem:[%s2953_s6 + $0x78] sm:$0xff]  ;;  %v1384_v22 = vld [vmem:[%s2949_s2 + $0x10] sm:$0xff] }
 0x1ce   :  { %v840_v20 = vld [vmem:[%s2955_s8 + $0x18] sm:$0xff] }
 0x1cf   :  { %v289_v23 = vadd.f32 3.0, %v282_v21  ;;  %v304_v46 = vmul.f32 0.16666667, %v300_v43  ;;  %v852_v38 = vld [vmem:[%s2955_s8 + $0x78] sm:$0xff] }
 0x1d1   :  { %v293_v27 = vmax.f32 %v289_v23, 0.0  ;;  %v1973_v49 = vpack.i.bf16 %v303_v47, %v304_v46  ;;  %v1385_v23 = vld [vmem:[%s2949_s2 + $0x18] sm:$0xff]  ;;  %s2137_s2 = smov 16  }
 0x1d2   :  { %1514 = vmatpush.msrb.mxu0 %v1385_v23  ;;  %v846_v23 = vld [vmem:[%s2955_s8 + $0x48] sm:$0xff] }
 0x1d3   :  { %v297_v32 = vmin.f32 %v293_v27, 6.0  ;;  %v342_v27 = vpop.permute.xlu0 %341 }
 0x1d4   :  { %v284_v28 = vpop.f32.mrf.mxu2  ;;  %1515 = vmatpush.msrb.mxu0 %v1383_v26 }
 0x1d5   :  { %v285_v30 = vadd.f32 %v284_v28, %v256_v11  ;;  %v301_v36 = vmul.f32 %v297_v32, %v282_v21  ;;  %v321_v11 = vld [vmem:[%s2953_s6 + $0x70] sm:$0xff]  ;;  %v850_v21 = vld [vmem:[%s2955_s8 + $0x68] sm:$0xff] }
 0x1d6   :  { %v842_v32 = vld [vmem:[%s2955_s8 + $0x28] sm:$0xff] }
 0x1d7   :  { %v290_v33 = vadd.f32 3.0, %v285_v30  ;;  %v305_v42 = vmul.f32 0.16666667, %v301_v36 }
 0x1d9   :  { %v294_v35 = vmax.f32 %v290_v33, 0.0  ;;  %v2663_v33 = vpop.permute.xlu1 %871 }
 0x1db   :  { %v298_v37 = vmin.f32 %v294_v35, 6.0  ;;  %v1567_v35 = vld [vmem:[%s2950_s3 + $0x10] sm:$0xff]  ;;  %v2676_v43 = vpop.permute.xlu0 %876 }
 0x1dc   :  { %1631 = vmatpush.msrb.mxu1 %v1567_v35 }
 0x1dd   :  { %v302_v39 = vmul.f32 %v298_v37, %v285_v30  ;;  %v851_v30 = vld [vmem:[%s2955_s8 + $0x70] sm:$0xff] }
 0x1df   :  { %v306_v41 = vmul.f32 0.16666667, %v302_v39 }
 0x1e1   :  { %480 = vmatpush.msra.mxu3 %v306_v41  ;;  %v1968_v44 = vpack.i.bf16 %v305_v42, %v306_v41 }
 0x1e3   :  { %1969 = vrot.lane.b32.xlu2 %v1968_v44, %s2134_s4  ;;  %481 = vmatpush.msra.mxu3 %v305_v42  ;;  %v843_v42 = vld [vmem:[%s2955_s8 + $0x30] sm:$0xff]  ;;  %v352_v44 = vpop.permute.xlu1 %351 }
 0x1e5   :  { %482 = vmatpush.msra.mxu3 %v304_v46 }
 0x1e7   :  { %483 = vmatpush.msra.mxu3 %v303_v47 }
 0x1e8   :  { %1829 = vmatmul.msk.f32.vlgmr.msra.gmra.mxu3 %vm419_vm0, %v307_v48 }
 0x1eb   :  { %1974 = vrot.lane.b32.xlu2 %v1973_v49, %s2134_s4  ;;  %s1817_s4 = sshll.u32 %s2957_s10, 4  ;;  %s1818_s4 = int_to_ptr.hbm [resolvable:$true] %s1817_s4 }
 0x1f0   :  { %1830 = vmatmul.msk.f32.gmra.mxu3 %vm419_vm0, %v308_v50 }
 0x1f3   :  { %346 = vperm.xlu2 %1978, %v324_v52   ;;  %v844_v52 = vld [vmem:[%s2955_s8 + $0x38] sm:$0xff] }
 0x1f8   :  { %1831 = vmatmul.msk.f32.gmra.mxu3 %vm419_vm0, %v309_v51 }
 0x1fb   :  { %881 = vperm.xlu2 %1978, %v855_v55  }
 0x200   :  { %1832 = vmatmul.msk.f32.gmra.mxu3 %vm419_vm0, %v310_v53 }
 0x203   :  { %361 = vperm.xlu2 %1978, %v327_v57  }
 0x208   :  { %1833 = vmatmul.msk.f32.gmra.mxu3 %vm419_vm0, %v311_v54  ;;  %v1568_v54 = vld [vmem:[%s2950_s3 + $0x18] sm:$0xff] }
 0x20b   :  { %896 = vperm.xlu2 %1978, %v858_v60  }
 0x210   :  { %1834 = vmatmul.msk.f32.gmra.mxu3 %vm419_vm0, %v312_v56  ;;  %v357_v56 = vpop.permute.xlu0 %356 }
 0x213   :  { %376 = vperm.xlu2 %1978, %v330_v62  }
 0x218   :  { %1835 = vmatmul.msk.f32.gmra.mxu3 %vm419_vm0, %v313_v58 }
 0x21b   :  { %911 = vperm.xlu2 %1978, %v861_v14  }
 0x220   :  { %1836 = vmatmul.msk.f32.gmra.mxu3 %vm419_vm0, %v314_v59 }
 0x223   :  { %391 = vperm.xlu2 %1978, %v333_v8  }
 0x228   :  { %1837 = vmatmul.msk.f32.gmra.mxu3 %vm419_vm0, %v315_v61 }
 0x22b   :  { %926 = vperm.xlu2 %1978, %v864_v1  }
 0x230   :  { %1838 = vmatmul.msk.f32.gmra.mxu3 %vm419_vm0, %v316_v63 }
 0x233   :  { %406 = vperm.xlu2 %1978, %v336_v5  }
 0x238   :  { %1839 = vmatmul.msk.f32.gmra.mxu3 %vm419_vm0, %v317_v16 }
 0x23b   :  { %941 = vperm.xlu2 %1978, %v867_v18  }
 0x23d   :  { %v1970_v15 = vpop.permute.xlu2 %1969 }
 0x23e   :  { %v1971_v12 = vunpack.i.l.bf16 %v1970_v15  ;;  %v1972_v10 = vunpack.i.h.bf16 %v1970_v15 }
 0x240   :  { %1840 = vmatmul.msk.f32.gmra.mxu3 %vm419_vm0, %v318_v17  ;;  %1025 = vmatpush.msrb.mxu2 %v1971_v12 }
 0x241   :  { %1957 = vmatpush.msrb.mxu3 %v1971_v12 }
 0x242   :  { %1026 = vmatpush.msrb.mxu2 %v1972_v10 }
 0x243   :  { %1958 = vmatpush.msrb.mxu3 %v1972_v10  ;;  %v845_v10 = vld [vmem:[%s2955_s8 + $0x40] sm:$0xff] }
 0x245   :  { %v1975_v6 = vpop.permute.xlu2 %1974 }
 0x246   :  { %v1976_v9 = vunpack.i.l.bf16 %v1975_v6  ;;  %v1977_v4 = vunpack.i.h.bf16 %v1975_v6  ;;  %v2691_v6 = vpop.permute.xlu1 %886 }
 0x248   :  { %1841 = vmatmul.msk.f32.gmra.mxu3 %vm419_vm0, %v319_v7  ;;  %1027 = vmatpush.msrb.mxu2 %v1976_v9 }
 0x249   :  { %1959 = vmatpush.msrb.mxu3 %v1976_v9 }
 0x24a   :  { %1028 = vmatpush.msrb.mxu2 %v1977_v4 }
 0x24b   :  { %1960 = vmatpush.msrb.mxu3 %v1977_v4  ;;  %1861 = vmatmul.msk.f32.vlgmr.msrb.gmra.mxu2 %vm419_vm0, %v837_v0 }
 0x24c   :  { %1696 = vmatpush.msra.mxu2 %v1568_v54 }
 0x24d   :  { %1449 = vmatpush.msra.mxu3 %v1384_v22  ;;  %v347_v34 = vpop.permute.xlu2 %346 }
 0x24f   :  { %1450 = vmatpush.msra.mxu3 %v1382_v25  ;;  %v2699_v25 = vpop.permute.xlu0 %891 }
 0x250   :  { %1842 = vmatmul.msk.f32.gmra.mxu3 %vm419_vm0, %v320_v2 }
 0x253   :  { %1862 = vmatmul.msk.f32.gmra.mxu2 %vm419_vm0, %v838_v3 }
 0x255   :  { %v2679_v51 = vpop.permute.xlu2 %881 }
 0x258   :  { %1843 = vmatmul.msk.f32.gmra.mxu3 %vm419_vm0, %v321_v11 }
 0x25b   :  { %1863 = vmatmul.msk.f32.gmra.mxu2 %vm419_vm0, %v839_v13 }
 0x25d   :  { %v362_v9 = vpop.permute.xlu2 %361 }
 0x260   :  { %1844 = vmatmul.msk.f32.gmra.mxu3 %vm419_vm0, %v322_v19 }
 0x263   :  { %1864 = vmatmul.msk.f32.gmra.mxu2 %vm419_vm0, %v840_v20 }
 0x268   :  { %1874 = vmatmul.msk.f32.vlgmr.msrb.gmra.mxu3 %vm419_vm0, %v850_v21 }
 0x26b   :  { %v485_v28 = vpop.f32.mrf.mxu3  ;;  %1865 = vmatmul.msk.f32.gmra.mxu2 %vm419_vm0, %v841_v24 }
 0x26c   :  { %v486_v29 = vadd.f32 %v485_v28, %v342_v27  ;;  %v367_v28 = vpop.permute.xlu1 %366 }
 0x26e   :  { %v1845_v31 = vmul.f32 -1.442695, %v486_v29 }
 0x270   :  { %1979 = vpow2.f32 %v1845_v31  ;;  %1875 = vmatmul.msk.f32.gmra.mxu3 %vm419_vm0, %v851_v30 }
 0x273   :  { %v488_v36 = vpop.f32.mrf.mxu3  ;;  %1866 = vmatmul.msk.f32.gmra.mxu2 %vm419_vm0, %v842_v32 }
 0x274   :  { %v489_v37 = vadd.f32 %v488_v36, %v347_v34 }
 0x276   :  { %v1980_v39 = vpop.eup %1979  ;;  %v1846_v40 = vmul.f32 -1.442695, %v489_v37 }
 0x277   :  { %v581_v41 = vadd.f32 1.0, %v1980_v39 }
 0x278   :  { %1981 = vpow2.f32 %v1846_v40  ;;  %1876 = vmatmul.msk.f32.gmra.mxu3 %vm419_vm0, %v852_v38 }
 0x279   :  { %1983 = vrcp.f32 %v581_v41  ;;  %v608_v58 = vand.u32 2147483648, %v581_v41  ;;  %v606_v61 = vand.u32 2147483647, %v581_v41  ;;  %vm602_vm2 = vweird.f32 %v581_v41 }
 0x27b   :  { %v491_v45 = vpop.f32.mrf.mxu3  ;;  %1867 = vmatmul.msk.f32.gmra.mxu2 %vm419_vm0, %v843_v42  ;;  %v609_v17 = vor.u32 1.1754944e-38, %v608_v58  ;;  %vm607_vm5 = vcmp.eq.f32.partialorder %v606_v61, 8.507059e+37 }
 0x27c   :  { %v492_v46 = vadd.f32 %v491_v45, %v352_v44  ;;  %v847_v44 = vld [vmem:[%s2955_s8 + $0x50] sm:$0xff] }
 0x27e   :  { %v1982_v47 = vpop.eup %1981  ;;  %v1847_v48 = vmul.f32 -1.442695, %v492_v46 }
 0x27f   :  { %v1984_v49 = vpop.eup %1983  ;;  %v582_v50 = vadd.f32 1.0, %v1982_v47 }
 0x280   :  { %1985 = vpow2.f32 %v1847_v48  ;;  %v598_v53 = vmul.f32 %v1984_v49, %v581_v41  ;;  %vm603_vm1 = vweird.f32 %v1984_v49  ;;  %v2704_v41 = vpop.permute.xlu2 %896  ;;  %v372_v48 = vpop.permute.xlu0 %371 }
 0x281   :  { %1987 = vrcp.f32 %v582_v50  ;;  %vm604_vm3 = vmor %vm602_vm2, %vm603_vm1  ;;  %v623_v4 = vand.u32 2147483648, %v582_v50  ;;  %vm617_vm6 = vweird.f32 %v582_v50  ;;  %v621_v1 = vand.u32 2147483647, %v582_v50 }
 0x282   :  { %v599_v55 = vsub.f32 1.0, %v598_v53 }
 0x283   :  { %v494_v57 = vpop.f32.mrf.mxu3  ;;  %1868 = vmatmul.msk.f32.gmra.mxu2 %vm419_vm0, %v844_v52  ;;  %v624_v11 = vor.u32 1.1754944e-38, %v623_v4  ;;  %vm622_vm9 = vcmp.eq.f32.partialorder %v621_v1, 8.507059e+37 }
 0x284   :  { %v495_v59 = vadd.f32 %v494_v57, %v357_v56  ;;  %v600_v60 = vmul.f32 %v1984_v49, %v599_v55 }
 0x286   :  { %v1986_v62 = vpop.eup %1985  ;;  %v1848_v63 = vmul.f32 -1.442695, %v495_v59  ;;  %v601_v16 = vadd.f32 %v1984_v49, %v600_v60 }
 0x287   :  { %v1988_v14 = vpop.eup %1987  ;;  %v583_v15 = vadd.f32 1.0, %v1986_v62  ;;  %v848_v62 = vld [vmem:[%s2955_s8 + $0x58] sm:$0xff] }
 0x288   :  { %1989 = vpow2.f32 %v1848_v63  ;;  %v605_v12 = vsel %vm604_vm3, %v1984_v49, %v601_v16  ;;  %v613_v8 = vmul.f32 %v1988_v14, %v582_v50  ;;  %vm618_vm7 = vweird.f32 %v1988_v14  ;;  %v2715_v16 = vpop.permute.xlu1 %901 }
 0x289   :  { %1991 = vrcp.f32 %v583_v15  ;;  %v610_v7 = vsel %vm607_vm5, %v609_v17, %v605_v12  ;;  %vm619_vm8 = vmor %vm617_vm6, %vm618_vm7  ;;  %v638_v30 = vand.u32 2147483648, %v583_v15  ;;  %v636_v34 = vand.u32 2147483647, %v583_v15 }
 0x28a   :  { %1893 = vmatmul.msk.f32.vlgmr.msra.gmra.mxu3 %vm1386_vm4, %v610_v7  ;;  %1909 = vmatmul.msk.f32.vlgmr.msrb.gmra.mxu0 %vm1386_vm4, %v610_v7  ;;  %v614_v0 = vsub.f32 1.0, %v613_v8  ;;  %vm632_vm11 = vweird.f32 %v583_v15 }
 0x28b   :  { %v497_v2 = vpop.f32.mrf.mxu3  ;;  %1869 = vmatmul.msk.f32.gmra.mxu2 %vm419_vm0, %v845_v10  ;;  %v639_v40 = vor.u32 1.1754944e-38, %v638_v30  ;;  %vm637_vm13 = vcmp.eq.f32.partialorder %v636_v34, 8.507059e+37 }
 0x28c   :  { %v498_v3 = vadd.f32 %v497_v2, %v362_v9  ;;  %v615_v5 = vmul.f32 %v1988_v14, %v614_v0 }
 0x28e   :  { %v1990_v13 = vpop.eup %1989  ;;  %v1849_v18 = vmul.f32 -1.442695, %v498_v3  ;;  %v616_v19 = vadd.f32 %v1988_v14, %v615_v5 }
 0x28f   :  { %v1992_v20 = vpop.eup %1991  ;;  %v584_v21 = vadd.f32 1.0, %v1990_v13  ;;  %v849_v13 = vld [vmem:[%s2955_s8 + $0x60] sm:$0xff] }
 0x290   :  { %1993 = vpow2.f32 %v1849_v18  ;;  %v620_v22 = vsel %vm619_vm8, %v1988_v14, %v616_v19  ;;  %v628_v24 = vmul.f32 %v1992_v20, %v583_v15  ;;  %vm633_vm10 = vweird.f32 %v1992_v20  ;;  %v377_v15 = vpop.permute.xlu2 %376  ;;  %v2723_v19 = vpop.permute.xlu0 %906 }
 0x291   :  { %1995 = vrcp.f32 %v584_v21  ;;  %v625_v26 = vsel %vm622_vm9, %v624_v11, %v620_v22  ;;  %vm634_vm12 = vmor %vm632_vm11, %vm633_vm10  ;;  %v653_v50 = vand.u32 2147483648, %v584_v21  ;;  %v651_v54 = vand.u32 2147483647, %v584_v21  ;;  %v382_v22 = vpop.permute.xlu1 %381 }
 0x292   :  { %1894 = vmatmul.msk.f32.gmra.mxu3 %vm1386_vm4, %v625_v26  ;;  %1910 = vmatmul.msk.f32.gmra.mxu0 %vm1386_vm4, %v625_v26  ;;  %v629_v27 = vsub.f32 1.0, %v628_v24  ;;  %vm647_vm15 = vweird.f32 %v584_v21 }
 0x293   :  { %v500_v29 = vpop.f32.mrf.mxu3  ;;  %1870 = vmatmul.msk.f32.gmra.mxu2 %vm419_vm0, %v846_v23  ;;  %v654_v60 = vor.u32 1.1754944e-38, %v653_v50  ;;  %vm652_vm2 = vcmp.eq.f32.partialorder %v651_v54, 8.507059e+37 }
 0x294   :  { %v501_v31 = vadd.f32 %v500_v29, %v367_v28  ;;  %v630_v32 = vmul.f32 %v1992_v20, %v629_v27 }
 0x296   :  { %v1994_v35 = vpop.eup %1993  ;;  %v1850_v36 = vmul.f32 -1.442695, %v501_v31  ;;  %v631_v37 = vadd.f32 %v1992_v20, %v630_v32 }
 0x297   :  { %v1996_v38 = vpop.eup %1995  ;;  %v585_v39 = vadd.f32 1.0, %v1994_v35 }
 0x298   :  { %1997 = vpow2.f32 %v1850_v36  ;;  %v635_v42 = vsel %vm634_vm12, %v1992_v20, %v631_v37  ;;  %v643_v45 = vmul.f32 %v1996_v38, %v584_v21  ;;  %vm648_vm14 = vweird.f32 %v1996_v38  ;;  %v2728_v36 = vpop.permute.xlu2 %911 }
 0x299   :  { %1999 = vrcp.f32 %v585_v39  ;;  %v640_v46 = vsel %vm637_vm13, %v639_v40, %v635_v42  ;;  %vm649_vm1 = vmor %vm647_vm15, %vm648_vm14  ;;  %v668_v17 = vand.u32 2147483648, %v585_v39  ;;  %vm662_vm3 = vweird.f32 %v585_v39  ;;  %v1565_v40 = vld [vmem:[%s2950_s3] sm:$0xff] }
 0x29a   :  { %1895 = vmatmul.msk.f32.gmra.mxu3 %vm1386_vm4, %v640_v46  ;;  %1911 = vmatmul.msk.f32.gmra.mxu0 %vm1386_vm4, %v640_v46  ;;  %v644_v47 = vsub.f32 1.0, %v643_v45  ;;  %v666_v10 = vand.u32 2147483647, %v585_v39 }
 0x29b   :  { %v503_v49 = vpop.f32.mrf.mxu3  ;;  %1871 = vmatmul.msk.f32.gmra.mxu2 %vm419_vm0, %v847_v44  ;;  %v669_v4 = vor.u32 1.1754944e-38, %v668_v17  ;;  %v387_v44 = vpop.permute.xlu0 %386  ;;  %1632 = vmatpush.msrb.mxu1 %v1565_v40 }
 0x29c   :  { %v504_v52 = vadd.f32 %v503_v49, %v372_v48  ;;  %v645_v53 = vmul.f32 %v1996_v38, %v644_v47  ;;  %vm667_vm7 = vcmp.eq.f32.partialorder %v666_v10, 8.507059e+37  ;;  %v1566_v10 = vld [vmem:[%s2950_s3 + $0x8] sm:$0xff]  ;;  %s2135_s3 = smov [#allocation2]  }
 0x29d   :  { %1697 = vmatpush.msra.mxu2 %v1566_v10  ;;  %s1815_s27 = sshll.u32 %s2135_s3, 4  ;;  %s1816_s27 = int_to_ptr.vmem [resolvable:$true] %s1815_s27 }
 0x29e   :  { %v1998_v55 = vpop.eup %1997  ;;  %v1851_v56 = vmul.f32 -1.442695, %v504_v52  ;;  %v646_v57 = vadd.f32 %v1996_v38, %v645_v53 }
 0x29f   :  { %v2000_v58 = vpop.eup %1999  ;;  %v586_v59 = vadd.f32 1.0, %v1998_v55 }
 0x2a0   :  { %2001 = vpow2.f32 %v1851_v56  ;;  %v650_v61 = vsel %vm649_vm1, %v1996_v38, %v646_v57  ;;  %v658_v63 = vmul.f32 %v2000_v58, %v585_v39  ;;  %vm663_vm5 = vweird.f32 %v2000_v58 }
 0x2a1   :  { %2003 = vrcp.f32 %v586_v59  ;;  %v655_v14 = vsel %vm652_vm2, %v654_v60, %v650_v61  ;;  %vm664_vm6 = vmor %vm662_vm3, %vm663_vm5  ;;  %v683_v24 = vand.u32 2147483648, %v586_v59  ;;  %v681_v28 = vand.u32 2147483647, %v586_v59  ;;  %v392_v61 = vpop.permute.xlu2 %391 }
 0x2a2   :  { %1896 = vmatmul.msk.f32.gmra.mxu3 %vm1386_vm4, %v655_v14  ;;  %1912 = vmatmul.msk.f32.gmra.mxu0 %vm1386_vm4, %v655_v14  ;;  %v659_v12 = vsub.f32 1.0, %v658_v63  ;;  %vm677_vm9 = vweird.f32 %v586_v59 }
 0x2a3   :  { %v506_v8 = vpop.f32.mrf.mxu3  ;;  %1872 = vmatmul.msk.f32.gmra.mxu2 %vm419_vm0, %v848_v62  ;;  %v684_v35 = vor.u32 1.1754944e-38, %v683_v24  ;;  %vm682_vm11 = vcmp.eq.f32.partialorder %v681_v28, 8.507059e+37 }
 0x2a4   :  { %v507_v7 = vadd.f32 %v506_v8, %v377_v15  ;;  %v660_v9 = vmul.f32 %v2000_v58, %v659_v12 }
 0x2a6   :  { %v2002_v0 = vpop.eup %2001  ;;  %v1852_v1 = vmul.f32 -1.442695, %v507_v7  ;;  %v661_v2 = vadd.f32 %v2000_v58, %v660_v9 }
 0x2a7   :  { %v2004_v3 = vpop.eup %2003  ;;  %v587_v5 = vadd.f32 1.0, %v2002_v0 }
 0x2a8   :  { %2005 = vpow2.f32 %v1852_v1  ;;  %v665_v11 = vsel %vm664_vm6, %v2000_v58, %v661_v2  ;;  %v673_v18 = vmul.f32 %v2004_v3, %v586_v59  ;;  %vm678_vm8 = vweird.f32 %v2004_v3  ;;  %v2735_v59 = vpop.permute.xlu1 %916 }
 0x2a9   :  { %2007 = vrcp.f32 %v587_v5  ;;  %v670_v20 = vsel %vm667_vm7, %v669_v4, %v665_v11  ;;  %vm679_vm10 = vmor %vm677_vm9, %vm678_vm8  ;;  %v698_v46 = vand.u32 2147483648, %v587_v5  ;;  %v696_v49 = vand.u32 2147483647, %v587_v5 }
 0x2aa   :  { %1897 = vmatmul.msk.f32.gmra.mxu3 %vm1386_vm4, %v670_v20  ;;  %1913 = vmatmul.msk.f32.gmra.mxu0 %vm1386_vm4, %v670_v20  ;;  %v674_v21 = vsub.f32 1.0, %v673_v18  ;;  %vm692_vm12 = vweird.f32 %v587_v5 }
 0x2ab   :  { %v509_v23 = vpop.f32.mrf.mxu3  ;;  %1873 = vmatmul.msk.f32.gmra.mxu2 %vm419_vm0, %v849_v13  ;;  %v699_v56 = vor.u32 1.1754944e-38, %v698_v46  ;;  %vm697_vm14 = vcmp.eq.f32.partialorder %v696_v49, 8.507059e+37 }
 0x2ac   :  { %v510_v26 = vadd.f32 %v509_v23, %v382_v22  ;;  %v675_v27 = vmul.f32 %v2004_v3, %v674_v21 }
 0x2ae   :  { %v2006_v29 = vpop.eup %2005  ;;  %v1853_v30 = vmul.f32 -1.442695, %v510_v26  ;;  %v676_v31 = vadd.f32 %v2004_v3, %v675_v27 }
 0x2af   :  { %v2008_v32 = vpop.eup %2007  ;;  %v588_v34 = vadd.f32 1.0, %v2006_v29 }
 0x2b0   :  { %2009 = vpow2.f32 %v1853_v30  ;;  %v680_v37 = vsel %vm679_vm10, %v2004_v3, %v676_v31  ;;  %v688_v38 = vmul.f32 %v2008_v32, %v587_v5  ;;  %vm693_vm0 = vweird.f32 %v2008_v32  ;;  %v2742_v5 = vpop.permute.xlu0 %921  ;;  %v397_v18 = vpop.permute.xlu1 %396 }
 0x2b1   :  { %2011 = vrcp.f32 %v588_v34  ;;  %v685_v39 = vsel %vm682_vm11, %v684_v35, %v680_v37  ;;  %vm694_vm13 = vmor %vm692_vm12, %vm693_vm0  ;;  %v713_v62 = vand.u32 2147483648, %v588_v34  ;;  %vm707_vm15 = vweird.f32 %v588_v34  ;;  %v2746_v37 = vpop.permute.xlu2 %926 }
 0x2b2   :  { %1898 = vmatmul.msk.f32.gmra.mxu3 %vm1386_vm4, %v685_v39  ;;  %1914 = vmatmul.msk.f32.gmra.mxu0 %vm1386_vm4, %v685_v39  ;;  %v689_v42 = vsub.f32 1.0, %v688_v38  ;;  %v711_v14 = vand.u32 2147483647, %v588_v34 }
 0x2b3   :  { %v512_v45 = vpop.f32.mrf.mxu3  ;;  %v714_v8 = vor.u32 1.1754944e-38, %v713_v62 }
 0x2b4   :  { %v513_v47 = vadd.f32 %v512_v45, %v387_v44  ;;  %v690_v48 = vmul.f32 %v2008_v32, %v689_v42  ;;  %vm712_vm3 = vcmp.eq.f32.partialorder %v711_v14, 8.507059e+37 }
 0x2b6   :  { %v2010_v50 = vpop.eup %2009  ;;  %v1854_v52 = vmul.f32 -1.442695, %v513_v47  ;;  %v691_v53 = vadd.f32 %v2008_v32, %v690_v48 }
 0x2b7   :  { %v2012_v54 = vpop.eup %2011  ;;  %v589_v55 = vadd.f32 1.0, %v2010_v50 }
 0x2b8   :  { %2013 = vpow2.f32 %v1854_v52  ;;  %v695_v57 = vsel %vm694_vm13, %v2008_v32, %v691_v53  ;;  %v703_v58 = vmul.f32 %v2012_v54, %v588_v34  ;;  %vm708_vm1 = vweird.f32 %v2012_v54  ;;  %v402_v39 = vpop.permute.xlu0 %401 }
 0x2b9   :  { %2015 = vrcp.f32 %v589_v55  ;;  %v700_v60 = vsel %vm697_vm14, %v699_v56, %v695_v57  ;;  %vm709_vm2 = vmor %vm707_vm15, %vm708_vm1  ;;  %v728_v21 = vand.u32 2147483648, %v589_v55  ;;  %v726_v24 = vand.u32 2147483647, %v589_v55  ;;  %v407_v14 = vpop.permute.xlu2 %406 }
 0x2ba   :  { %1899 = vmatmul.msk.f32.gmra.mxu3 %vm1386_vm4, %v700_v60  ;;  %1915 = vmatmul.msk.f32.gmra.mxu0 %vm1386_vm4, %v700_v60  ;;  %v704_v63 = vsub.f32 1.0, %v703_v58  ;;  %vm722_vm6 = vweird.f32 %v589_v55  ;;  %v2753_v58 = vpop.permute.xlu1 %931 }
 0x2bb   :  { %v515_v15 = vpop.f32.mrf.mxu3  ;;  %v729_v31 = vor.u32 1.1754944e-38, %v728_v21  ;;  %vm727_vm8 = vcmp.eq.f32.partialorder %v726_v24, 8.507059e+37 }
 0x2bc   :  { %v516_v17 = vadd.f32 %v515_v15, %v392_v61  ;;  %v705_v12 = vmul.f32 %v2012_v54, %v704_v63 }
 0x2be   :  { %v2014_v7 = vpop.eup %2013  ;;  %v1855_v9 = vmul.f32 -1.442695, %v516_v17  ;;  %v706_v4 = vadd.f32 %v2012_v54, %v705_v12 }
 0x2bf   :  { %v2016_v0 = vpop.eup %2015  ;;  %v590_v1 = vadd.f32 1.0, %v2014_v7 }
 0x2c0   :  { %2017 = vpow2.f32 %v1855_v9  ;;  %v710_v2 = vsel %vm709_vm2, %v2012_v54, %v706_v4  ;;  %v718_v3 = vmul.f32 %v2016_v0, %v589_v55  ;;  %vm723_vm5 = vweird.f32 %v2016_v0 }
 0x2c1   :  { %2019 = vrcp.f32 %v590_v1  ;;  %v715_v11 = vsel %vm712_vm3, %v714_v8, %v710_v2  ;;  %vm724_vm7 = vmor %vm722_vm6, %vm723_vm5  ;;  %v743_v42 = vand.u32 2147483648, %v590_v1  ;;  %v741_v46 = vand.u32 2147483647, %v590_v1 }
 0x2c2   :  { %1900 = vmatmul.msk.f32.gmra.mxu3 %vm1386_vm4, %v715_v11  ;;  %1916 = vmatmul.msk.f32.gmra.mxu0 %vm1386_vm4, %v715_v11  ;;  %v719_v13 = vsub.f32 1.0, %v718_v3  ;;  %vm737_vm10 = vweird.f32 %v590_v1  ;;  %v412_v24 = vpop.permute.xlu1 %411 }
 0x2c3   :  { %v518_v20 = vpop.f32.mrf.mxu3  ;;  %v744_v55 = vor.u32 1.1754944e-38, %v743_v42  ;;  %vm742_vm0 = vcmp.eq.f32.partialorder %v741_v46, 8.507059e+37 }
 0x2c4   :  { %v519_v22 = vadd.f32 %v518_v20, %v397_v18  ;;  %v720_v23 = vmul.f32 %v2016_v0, %v719_v13  ;;  %v2768_v20 = vpop.permute.xlu0 %936 }
 0x2c6   :  { %v2018_v26 = vpop.eup %2017  ;;  %v1856_v27 = vmul.f32 -1.442695, %v519_v22  ;;  %v721_v28 = vadd.f32 %v2016_v0, %v720_v23 }
 0x2c7   :  { %v2020_v29 = vpop.eup %2019  ;;  %v591_v30 = vadd.f32 1.0, %v2018_v26 }
 0x2c8   :  { %2021 = vpow2.f32 %v1856_v27  ;;  %v725_v32 = vsel %vm724_vm7, %v2016_v0, %v721_v28  ;;  %v733_v34 = vmul.f32 %v2020_v29, %v590_v1  ;;  %vm738_vm9 = vweird.f32 %v2020_v29 }
 0x2c9   :  { %2023 = vrcp.f32 %v591_v30  ;;  %v730_v35 = vsel %vm727_vm8, %v729_v31, %v725_v32  ;;  %vm739_vm11 = vmor %vm737_vm10, %vm738_vm9  ;;  %v758_v62 = vand.u32 2147483648, %v591_v30  ;;  %vm752_vm12 = vweird.f32 %v591_v30 }
 0x2ca   :  { %1901 = vmatmul.msk.f32.gmra.mxu3 %vm1386_vm4, %v730_v35  ;;  %1917 = vmatmul.msk.f32.gmra.mxu0 %vm1386_vm4, %v730_v35  ;;  %v734_v38 = vsub.f32 1.0, %v733_v34 }
 0x2cb   :  { %v521_v40 = vpop.f32.mrf.mxu3  ;;  %v759_v8 = vor.u32 1.1754944e-38, %v758_v62 }
 0x2cc   :  { %v522_v44 = vadd.f32 %v521_v40, %v402_v39  ;;  %v735_v45 = vmul.f32 %v2020_v29, %v734_v38 }
 0x2ce   :  { %v2022_v47 = vpop.eup %2021  ;;  %v1857_v48 = vmul.f32 -1.442695, %v522_v44  ;;  %v1030_v49 = vpop.f32.mrf.mxu2  ;;  %v736_v50 = vadd.f32 %v2020_v29, %v735_v45 }
 0x2cf   :  { %v2024_v52 = vpop.eup %2023  ;;  %v2750_v53 = vadd.f32 1.0, %v2022_v47  ;;  %v1031_v54 = vadd.f32 %v1030_v49, %v2663_v33  ;;  %v756_v33 = vand.u32 2147483647, %v591_v30 }
 0x2d0   :  { %2025 = vpow2.f32 %v1857_v48  ;;  %v740_v56 = vsel %vm739_vm11, %v2020_v29, %v736_v50  ;;  %v748_v57 = vmul.f32 %v2024_v52, %v591_v30  ;;  %vm753_vm13 = vweird.f32 %v2024_v52 }
 0x2d1   :  { %2027 = vrcp.f32 %v2750_v53  ;;  %v1877_v60 = vmul.f32 -1.442695, %v1031_v54  ;;  %v745_v61 = vsel %vm742_vm0, %v744_v55, %v740_v56  ;;  %vm2758_vm14 = vmor %vm752_vm12, %vm753_vm13  ;;  %vm757_vm15 = vcmp.eq.f32.partialorder %v756_v33, 8.507059e+37  ;;  %v417_v55 = vpop.permute.xlu0 %416 }
 0x2d2   :  { %1902 = vmatmul.msk.f32.gmra.mxu3 %vm1386_vm4, %v745_v61  ;;  %1918 = vmatmul.msk.f32.gmra.mxu0 %vm1386_vm4, %v745_v61  ;;  %v749_v63 = vsub.f32 1.0, %v748_v57  ;;  %v771_v27 = vand.u32 2147483647, %v2750_v53  ;;  %v773_v28 = vand.u32 2147483648, %v2750_v53  ;;  %vm767_vm2 = vweird.f32 %v2750_v53 }
 0x2d3   :  { %2029 = vpow2.f32 %v1877_v60  ;;  %v524_v15 = vpop.f32.mrf.mxu3 }
 0x2d4   :  { %v525_v17 = vadd.f32 %v524_v15, %v407_v14  ;;  %v750_v12 = vmul.f32 %v2024_v52, %v749_v63  ;;  %vm772_vm5 = vcmp.eq.f32.partialorder %v771_v27, 8.507059e+37  ;;  %v774_v42 = vor.u32 1.1754944e-38, %v773_v28 }
 0x2d6   :  { %v2026_v7 = vpop.eup %2025  ;;  %v1858_v9 = vmul.f32 -1.442695, %v525_v17  ;;  %v1033_v4 = vpop.f32.mrf.mxu2  ;;  %v751_v0 = vadd.f32 %v2024_v52, %v750_v12 }
 0x2d7   :  { %v2028_v1 = vpop.eup %2027  ;;  %v2762_v2 = vadd.f32 1.0, %v2026_v7  ;;  %v1034_v3 = vadd.f32 %v1033_v4, %v2676_v43 }
 0x2d8   :  { %2031 = vpow2.f32 %v1858_v9  ;;  %v755_v11 = vsel %vm2758_vm14, %v2024_v52, %v751_v0  ;;  %v763_v13 = vmul.f32 %v2028_v1, %v2750_v53  ;;  %vm768_vm1 = vweird.f32 %v2028_v1 }
 0x2d9   :  { %v2030_v18 = vpop.eup %2029  ;;  %2033 = vrcp.f32 %v2762_v2  ;;  %v1878_v21 = vmul.f32 -1.442695, %v1034_v3  ;;  %v760_v22 = vsel %vm757_vm15, %v759_v8, %v755_v11  ;;  %vm769_vm3 = vmor %vm767_vm2, %vm768_vm1  ;;  %v786_v46 = vand.u32 2147483647, %v2762_v2 }
 0x2da   :  { %v2771_v23 = vadd.f32 1.0, %v2030_v18  ;;  %1903 = vmatmul.msk.f32.gmra.mxu3 %vm1386_vm4, %v760_v22  ;;  %1919 = vmatmul.msk.f32.gmra.mxu0 %vm1386_vm4, %v760_v22  ;;  %v764_v43 = vsub.f32 1.0, %v763_v13  ;;  %v788_v50 = vand.u32 2147483648, %v2762_v2  ;;  %vm782_vm7 = vweird.f32 %v2762_v2 }
 0x2db   :  { %2035 = vpow2.f32 %v1878_v21  ;;  %v527_v26 = vpop.f32.mrf.mxu3  ;;  %vm2795_vm8 = vcmp.eq.f32.partialorder %v786_v46, 8.507059e+37 }
 0x2dc   :  { %2037 = vrcp.f32 %v2771_v23  ;;  %v528_v29 = vadd.f32 %v527_v26, %v412_v24  ;;  %v765_v30 = vmul.f32 %v2028_v1, %v764_v43  ;;  %v1151_v54 = vand.u32 2147483647, %v2771_v23 }
 0x2dd   :  { %v1153_v60 = vand.u32 2147483648, %v2771_v23  ;;  %v789_v33 = vor.u32 1.1754944e-38, %v788_v50  ;;  %vm1147_vm9 = vweird.f32 %v2771_v23 }
 0x2de   :  { %v2032_v31 = vpop.eup %2031  ;;  %v1859_v32 = vmul.f32 -1.442695, %v528_v29  ;;  %v1036_v34 = vpop.f32.mrf.mxu2  ;;  %v766_v35 = vadd.f32 %v2028_v1, %v765_v30  ;;  %vm2800_vm10 = vcmp.eq.f32.partialorder %v1151_v54, 8.507059e+37 }
 0x2df   :  { %v2034_v38 = vpop.eup %2033  ;;  %v2779_v39 = vadd.f32 1.0, %v2032_v31  ;;  %v1037_v40 = vadd.f32 %v1036_v34, %v2679_v51 }
 0x2e0   :  { %2039 = vpow2.f32 %v1859_v32  ;;  %v770_v44 = vsel %vm769_vm3, %v2028_v1, %v766_v35  ;;  %v778_v45 = vmul.f32 %v2034_v38, %v2762_v2  ;;  %vm783_vm6 = vweird.f32 %v2034_v38 }
 0x2e1   :  { %v2036_v47 = vpop.eup %2035  ;;  %2041 = vrcp.f32 %v2779_v39  ;;  %v1879_v48 = vmul.f32 -1.442695, %v1037_v40  ;;  %v775_v49 = vsel %vm772_vm5, %v774_v42, %v770_v44  ;;  %vm784_vm11 = vmor %vm782_vm7, %vm783_vm6  ;;  %v1154_v2 = vor.u32 1.1754944e-38, %v1153_v60 }
 0x2e2   :  { %v2038_v52 = vpop.eup %2037  ;;  %v2786_v53 = vadd.f32 1.0, %v2036_v47  ;;  %1904 = vmatmul.msk.f32.gmra.mxu3 %vm1386_vm4, %v775_v49  ;;  %1920 = vmatmul.msk.f32.gmra.mxu0 %vm1386_vm4, %v775_v49  ;;  %v779_v51 = vsub.f32 1.0, %v778_v45  ;;  %v801_v24 = vand.u32 2147483647, %v2779_v39  ;;  %v803_v26 = vand.u32 2147483648, %v2779_v39 }
 0x2e3   :  { %2043 = vpow2.f32 %v1879_v48  ;;  %v530_v56 = vpop.f32.mrf.mxu3  ;;  %v1143_v57 = vmul.f32 %v2038_v52, %v2771_v23  ;;  %vm1148_vm0 = vweird.f32 %v2038_v52  ;;  %vm797_vm14 = vweird.f32 %v2779_v39 }
 0x2e4   :  { %2045 = vrcp.f32 %v2786_v53  ;;  %v531_v61 = vadd.f32 %v530_v56, %v417_v55  ;;  %v780_v62 = vmul.f32 %v2034_v38, %v779_v51  ;;  %vm1149_vm12 = vmor %vm1147_vm9, %vm1148_vm0  ;;  %v1166_v29 = vand.u32 2147483647, %v2786_v53 }
 0x2e5   :  { %v1144_v14 = vsub.f32 1.0, %v1143_v57  ;;  %vm2827_vm15 = vcmp.eq.f32.partialorder %v801_v24, 8.507059e+37  ;;  %v804_v40 = vor.u32 1.1754944e-38, %v803_v26  ;;  %v1168_v42 = vand.u32 2147483648, %v2786_v53 }
 0x2e6   :  { %v2040_v15 = vpop.eup %2039  ;;  %v1860_v17 = vmul.f32 -1.442695, %v531_v61  ;;  %v1039_v12 = vpop.f32.mrf.mxu2  ;;  %v781_v10 = vadd.f32 %v2034_v38, %v780_v62  ;;  %vm1162_vm3 = vweird.f32 %v2786_v53  ;;  %vm2836_vm5 = vcmp.eq.f32.partialorder %v1166_v29, 8.507059e+37 }
 0x2e7   :  { %v2042_v7 = vpop.eup %2041  ;;  %v2804_v9 = vadd.f32 1.0, %v2040_v15  ;;  %v1040_v4 = vadd.f32 %v1039_v12, %v2691_v6  ;;  %v1145_v0 = vmul.f32 %v2038_v52, %v1144_v14 }
 0x2e8   :  { %2047 = vpow2.f32 %v1860_v17  ;;  %v785_v1 = vsel %vm784_vm11, %v2034_v38, %v781_v10  ;;  %v793_v3 = vmul.f32 %v2042_v7, %v2779_v39  ;;  %vm798_vm13 = vweird.f32 %v2042_v7 }
 0x2e9   :  { %v2044_v11 = vpop.eup %2043  ;;  %2049 = vrcp.f32 %v2804_v9  ;;  %v1880_v13 = vmul.f32 -1.442695, %v1040_v4  ;;  %v790_v18 = vsel %vm2795_vm8, %v789_v33, %v785_v1  ;;  %v1146_v21 = vadd.f32 %v2038_v52, %v1145_v0  ;;  %vm799_vm1 = vmor %vm797_vm14, %vm798_vm13 }
 0x2ea   :  { %v2046_v22 = vpop.eup %2045  ;;  %v2811_v43 = vadd.f32 1.0, %v2044_v11  ;;  %1905 = vmatmul.msk.f32.gmra.mxu3 %vm1386_vm4, %v790_v18  ;;  %1921 = vmatmul.msk.f32.gmra.mxu0 %vm1386_vm4, %v790_v18  ;;  %v794_v6 = vsub.f32 1.0, %v793_v3  ;;  %v816_v57 = vand.u32 2147483647, %v2804_v9  ;;  %v818_v61 = vand.u32 2147483648, %v2804_v9 }
 0x2eb   :  { %2051 = vpow2.f32 %v1880_v13  ;;  %v1150_v27 = vsel %vm1149_vm12, %v2038_v52, %v1146_v21  ;;  %v1158_v28 = vmul.f32 %v2046_v22, %v2786_v53  ;;  %vm1163_vm2 = vweird.f32 %v2046_v22 }
 0x2ec   :  { %2053 = vrcp.f32 %v2811_v43  ;;  %v1155_v30 = vsel %vm2800_vm10, %v1154_v2, %v1150_v27  ;;  %v795_v31 = vmul.f32 %v2042_v7, %v794_v6  ;;  %vm1164_vm6 = vmor %vm1162_vm3, %vm1163_vm2  ;;  %v1169_v53 = vor.u32 1.1754944e-38, %v1168_v42 }
 0x2ed   :  { %1925 = vmatmul.msk.f32.vlgmr.msrb.gmra.mxu1 %vm1386_vm4, %v1155_v30  ;;  %1941 = vmatmul.msk.f32.vlgmr.msra.gmra.mxu2 %vm1386_vm4, %v1155_v30  ;;  %v1159_v23 = vsub.f32 1.0, %v1158_v28  ;;  %v1181_v15 = vand.u32 2147483647, %v2811_v43  ;;  %vm812_vm8 = vweird.f32 %v2804_v9  ;;  %v1183_v10 = vand.u32 2147483648, %v2811_v43 }
 0x2ee   :  { %v2048_v32 = vpop.eup %2047  ;;  %v1042_v34 = vpop.f32.mrf.mxu2  ;;  %v796_v35 = vadd.f32 %v2042_v7, %v795_v31  ;;  %v819_v4 = vor.u32 1.1754944e-38, %v818_v61  ;;  %vm817_vm11 = vcmp.eq.f32.partialorder %v816_v57, 8.507059e+37  ;;  %vm1177_vm0 = vweird.f32 %v2811_v43 }
 0x2ef   :  { %v2050_v44 = vpop.eup %2049  ;;  %v2832_v45 = vadd.f32 1.0, %v2048_v32  ;;  %v1043_v46 = vadd.f32 %v1042_v34, %v2699_v25  ;;  %v1160_v47 = vmul.f32 %v2046_v22, %v1159_v23  ;;  %vm1182_vm12 = vcmp.eq.f32.partialorder %v1181_v15, 8.507059e+37 }
 0x2f0   :  { %v800_v39 = vsel %vm799_vm1, %v2042_v7, %v796_v35  ;;  %v808_v49 = vmul.f32 %v2050_v44, %v2804_v9  ;;  %vm813_vm7 = vweird.f32 %v2050_v44 }
 0x2f1   :  { %v2052_v50 = vpop.eup %2051  ;;  %2055 = vrcp.f32 %v2832_v45  ;;  %v1881_v52 = vmul.f32 -1.442695, %v1043_v46  ;;  %v805_v51 = vsel %vm2827_vm15, %v804_v40, %v800_v39  ;;  %v1161_v25 = vadd.f32 %v2046_v22, %v1160_v47  ;;  %vm814_vm9 = vmor %vm812_vm8, %vm813_vm7 }
 0x2f2   :  { %v2054_v54 = vpop.eup %2053  ;;  %v2844_v55 = vadd.f32 1.0, %v2052_v50  ;;  %1906 = vmatmul.msk.f32.gmra.mxu3 %vm1386_vm4, %v805_v51  ;;  %1922 = vmatmul.msk.f32.gmra.mxu0 %vm1386_vm4, %v805_v51  ;;  %v809_v56 = vsub.f32 1.0, %v808_v49  ;;  %v833_v6 = vand.u32 2147483648, %v2832_v45  ;;  %v831_v24 = vand.u32 2147483647, %v2832_v45 }
 0x2f3   :  { %2057 = vpow2.f32 %v1881_v52  ;;  %v1165_v60 = vsel %vm1164_vm6, %v2046_v22, %v1161_v25  ;;  %v1173_v62 = vmul.f32 %v2054_v54, %v2811_v43  ;;  %vm1178_vm10 = vweird.f32 %v2054_v54 }
 0x2f4   :  { %2059 = vrcp.f32 %v2844_v55  ;;  %v1170_v63 = vsel %vm2836_vm5, %v1169_v53, %v1165_v60  ;;  %v810_v33 = vmul.f32 %v2050_v44, %v809_v56  ;;  %vm1179_vm13 = vmor %vm1177_vm0, %vm1178_vm10  ;;  %vm827_vm15 = vweird.f32 %v2832_v45 }
 0x2f5   :  { %1926 = vmatmul.msk.f32.gmra.mxu1 %vm1386_vm4, %v1170_v63  ;;  %1942 = vmatmul.msk.f32.gmra.mxu2 %vm1386_vm4, %v1170_v63  ;;  %v1174_v14 = vsub.f32 1.0, %v1173_v62  ;;  %v834_v23 = vor.u32 1.1754944e-38, %v833_v6  ;;  %v1198_v32 = vand.u32 2147483648, %v2844_v55  ;;  %v1196_v38 = vand.u32 2147483647, %v2844_v55 }
 0x2f6   :  { %v1045_v17 = vpop.f32.mrf.mxu2  ;;  %v811_v12 = vadd.f32 %v2050_v44, %v810_v33  ;;  %vm832_vm3 = vcmp.eq.f32.partialorder %v831_v24, 8.507059e+37  ;;  %vm1192_vm5 = vweird.f32 %v2844_v55 }
 0x2f7   :  { %v2056_v8 = vpop.eup %2055  ;;  %v1046_v7 = vadd.f32 %v1045_v17, %v2704_v41  ;;  %v1175_v0 = vmul.f32 %v2054_v54, %v1174_v14  ;;  %v1184_v41 = vor.u32 1.1754944e-38, %v1183_v10  ;;  %vm1197_vm7 = vcmp.eq.f32.partialorder %v1196_v38, 8.507059e+37 }
 0x2f8   :  { %v815_v1 = vsel %vm814_vm9, %v2050_v44, %v811_v12  ;;  %v823_v2 = vmul.f32 %v2056_v8, %v2832_v45  ;;  %vm828_vm14 = vweird.f32 %v2056_v8 }
 0x2f9   :  { %v2058_v3 = vpop.eup %2057  ;;  %v1882_v11 = vmul.f32 -1.442695, %v1046_v7  ;;  %v820_v13 = vsel %vm817_vm11, %v819_v4, %v815_v1  ;;  %v1176_v18 = vadd.f32 %v2054_v54, %v1175_v0  ;;  %vm829_vm1 = vmor %vm827_vm15, %vm828_vm14 }
 0x2fa   :  { %v2060_v9 = vpop.eup %2059  ;;  %v2862_v21 = vadd.f32 1.0, %v2058_v3  ;;  %1907 = vmatmul.msk.f32.gmra.mxu3 %vm1386_vm4, %v820_v13  ;;  %1923 = vmatmul.msk.f32.gmra.mxu0 %vm1386_vm4, %v820_v13  ;;  %v824_v22 = vsub.f32 1.0, %v823_v2 }
 0x2fb   :  { %2061 = vpow2.f32 %v1882_v11  ;;  %v1180_v43 = vsel %vm1179_vm13, %v2054_v54, %v1176_v18  ;;  %v1188_v26 = vmul.f32 %v2060_v9, %v2844_v55  ;;  %vm1193_vm2 = vweird.f32 %v2060_v9 }
 0x2fc   :  { %2063 = vrcp.f32 %v2862_v21  ;;  %v1185_v27 = vsel %vm1182_vm12, %v1184_v41, %v1180_v43  ;;  %v825_v28 = vmul.f32 %v2056_v8, %v824_v22  ;;  %vm1194_vm6 = vmor %vm1192_vm5, %vm1193_vm2  ;;  %v1213_v25 = vand.u32 2147483648, %v2862_v21 }
 0x2fd   :  { %1927 = vmatmul.msk.f32.gmra.mxu1 %vm1386_vm4, %v1185_v27  ;;  %1943 = vmatmul.msk.f32.gmra.mxu2 %vm1386_vm4, %v1185_v27  ;;  %v1189_v29 = vsub.f32 1.0, %v1188_v26  ;;  %v1211_v53 = vand.u32 2147483647, %v2862_v21  ;;  %vm1207_vm9 = vweird.f32 %v2862_v21 }
 0x2fe   :  { %v1048_v30 = vpop.f32.mrf.mxu2  ;;  %v826_v31 = vadd.f32 %v2056_v8, %v825_v28  ;;  %v1214_v63 = vor.u32 1.1754944e-38, %v1213_v25 }
 0x2ff   :  { %v1049_v34 = vadd.f32 %v1048_v30, %v2715_v16  ;;  %v1190_v35 = vmul.f32 %v2060_v9, %v1189_v29  ;;  %v1199_v16 = vor.u32 1.1754944e-38, %v1198_v32  ;;  %vm1212_vm11 = vcmp.eq.f32.partialorder %v1211_v53, 8.507059e+37 }
 0x300   :  { %v830_v40 = vsel %vm829_vm1, %v2056_v8, %v826_v31  ;;  %v1069_v31 = vpop.f32.mrf.mxu3 }
 0x301   :  { %v2062_v42 = vpop.eup %2061  ;;  %v1883_v44 = vmul.f32 -1.442695, %v1049_v34  ;;  %v835_v46 = vsel %vm832_vm3, %v834_v23, %v830_v40  ;;  %v1191_v47 = vadd.f32 %v2060_v9, %v1190_v35 }
 0x302   :  { %v2064_v39 = vpop.eup %2063  ;;  %v1131_v45 = vadd.f32 1.0, %v2062_v42  ;;  %1908 = vmatmul.msk.f32.gmra.mxu3 %vm1386_vm4, %v835_v46  ;;  %1924 = vmatmul.msk.f32.gmra.mxu0 %vm1386_vm4, %v835_v46 }
 0x303   :  { %2065 = vpow2.f32 %v1883_v44  ;;  %v1195_v48 = vsel %vm1194_vm6, %v2060_v9, %v1191_v47  ;;  %v1203_v49 = vmul.f32 %v2064_v39, %v2862_v21  ;;  %vm1208_vm8 = vweird.f32 %v2064_v39 }
 0x304   :  { %2067 = vrcp.f32 %v1131_v45  ;;  %v1200_v50 = vsel %vm1197_vm7, %v1199_v16, %v1195_v48  ;;  %vm1209_vm10 = vmor %vm1207_vm9, %vm1208_vm8  ;;  %v1228_v12 = vand.u32 2147483648, %v1131_v45  ;;  %v1226_v7 = vand.u32 2147483647, %v1131_v45 }
 0x305   :  { %1928 = vmatmul.msk.f32.gmra.mxu1 %vm1386_vm4, %v1200_v50  ;;  %1944 = vmatmul.msk.f32.gmra.mxu2 %vm1386_vm4, %v1200_v50  ;;  %v1204_v52 = vsub.f32 1.0, %v1203_v49  ;;  %vm1222_vm12 = vweird.f32 %v1131_v45  ;;  %v1070_v16 = vadd.f32 %v1069_v31, %v2768_v20 }
 0x306   :  { %v1051_v51 = vpop.f32.mrf.mxu2  ;;  %v1229_v11 = vor.u32 1.1754944e-38, %v1228_v12  ;;  %vm1227_vm14 = vcmp.eq.f32.partialorder %v1226_v7, 8.507059e+37 }
 0x307   :  { %v1052_v54 = vadd.f32 %v1051_v51, %v2723_v19  ;;  %v1205_v55 = vmul.f32 %v2064_v39, %v1204_v52 }
 0x308   :  { %v1072_v51 = vpop.f32.mrf.mxu3 }
 0x309   :  { %v2066_v56 = vpop.eup %2065  ;;  %v1884_v57 = vmul.f32 -1.442695, %v1052_v54  ;;  %v1206_v60 = vadd.f32 %v2064_v39, %v1205_v55  ;;  %v1890_v54 = vmul.f32 -1.442695, %v1070_v16 }
 0x30a   :  { %v2068_v61 = vpop.eup %2067  ;;  %v1132_v62 = vadd.f32 1.0, %v2066_v56 }
 0x30b   :  { %2069 = vpow2.f32 %v1884_v57  ;;  %v1210_v33 = vsel %vm1209_vm10, %v2064_v39, %v1206_v60  ;;  %v1218_v14 = vmul.f32 %v2068_v61, %v1131_v45  ;;  %vm1223_vm0 = vweird.f32 %v2068_v61 }
 0x30c   :  { %2071 = vrcp.f32 %v1132_v62  ;;  %v1215_v15 = vsel %vm1212_vm11, %v1214_v63, %v1210_v33  ;;  %vm1224_vm13 = vmor %vm1222_vm12, %vm1223_vm0  ;;  %v1243_v41 = vand.u32 2147483648, %v1132_v62  ;;  %v1241_v43 = vand.u32 2147483647, %v1132_v62 }
 0x30d   :  { %1929 = vmatmul.msk.f32.gmra.mxu1 %vm1386_vm4, %v1215_v15  ;;  %1945 = vmatmul.msk.f32.gmra.mxu2 %vm1386_vm4, %v1215_v15  ;;  %v1219_v19 = vsub.f32 1.0, %v1218_v14  ;;  %vm1237_vm1 = vweird.f32 %v1132_v62 }
 0x30e   :  { %v1054_v17 = vpop.f32.mrf.mxu2  ;;  %v1244_v30 = vor.u32 1.1754944e-38, %v1243_v41  ;;  %vm1242_vm3 = vcmp.eq.f32.partialorder %v1241_v43, 8.507059e+37 }
 0x30f   :  { %v1055_v10 = vadd.f32 %v1054_v17, %v2728_v36  ;;  %v1220_v8 = vmul.f32 %v2068_v61, %v1219_v19 }
 0x311   :  { %v2070_v4 = vpop.eup %2069  ;;  %v1885_v0 = vmul.f32 -1.442695, %v1055_v10  ;;  %v1221_v1 = vadd.f32 %v2068_v61, %v1220_v8 }
 0x312   :  { %v2072_v2 = vpop.eup %2071  ;;  %v1133_v3 = vadd.f32 1.0, %v2070_v4 }
 0x313   :  { %2073 = vpow2.f32 %v1885_v0  ;;  %v1225_v13 = vsel %vm1224_vm13, %v2068_v61, %v1221_v1  ;;  %v1233_v18 = vmul.f32 %v2072_v2, %v1132_v62  ;;  %vm1238_vm15 = vweird.f32 %v2072_v2  ;;  %v942_v61 = vpop.permute.xlu2 %941  ;;  %v1075_v0 = vpop.f32.mrf.mxu3 }
 0x314   :  { %2075 = vrcp.f32 %v1133_v3  ;;  %v1230_v9 = vsel %vm1227_vm14, %v1229_v11, %v1225_v13  ;;  %vm1239_vm2 = vmor %vm1237_vm1, %vm1238_vm15  ;;  %v1258_v38 = vand.u32 2147483648, %v1133_v3  ;;  %v1256_v44 = vand.u32 2147483647, %v1133_v3 }
 0x315   :  { %1930 = vmatmul.msk.f32.gmra.mxu1 %vm1386_vm4, %v1230_v9  ;;  %1946 = vmatmul.msk.f32.gmra.mxu2 %vm1386_vm4, %v1230_v9  ;;  %v1234_v36 = vsub.f32 1.0, %v1233_v18  ;;  %vm1252_vm6 = vweird.f32 %v1133_v3  ;;  %v1073_v14 = vadd.f32 %v1072_v51, %v942_v61  ;;  %v947_v18 = vpop.permute.xlu1 %946 }
 0x316   :  { %v1057_v21 = vpop.f32.mrf.mxu2  ;;  %v1259_v49 = vor.u32 1.1754944e-38, %v1258_v38  ;;  %vm1257_vm8 = vcmp.eq.f32.partialorder %v1256_v44, 8.507059e+37  ;;  %v1076_v41 = vadd.f32 %v1075_v0, %v947_v18 }
 0x317   :  { %v1058_v22 = vadd.f32 %v1057_v21, %v2735_v59  ;;  %v1235_v6 = vmul.f32 %v2072_v2, %v1234_v36  ;;  %v1891_v8 = vmul.f32 -1.442695, %v1073_v14 }
 0x319   :  { %v2074_v24 = vpop.eup %2073  ;;  %v1886_v26 = vmul.f32 -1.442695, %v1058_v22  ;;  %v1236_v27 = vadd.f32 %v2072_v2, %v1235_v6 }
 0x31a   :  { %v2076_v28 = vpop.eup %2075  ;;  %v1134_v29 = vadd.f32 1.0, %v2074_v24 }
 0x31b   :  { %2077 = vpow2.f32 %v1886_v26  ;;  %v1240_v23 = vsel %vm1239_vm2, %v2072_v2, %v1236_v27  ;;  %v1248_v32 = vmul.f32 %v2076_v28, %v1133_v3  ;;  %vm1253_vm5 = vweird.f32 %v2076_v28 }
 0x31c   :  { %2079 = vrcp.f32 %v1134_v29  ;;  %v1245_v34 = vsel %vm1242_vm3, %v1244_v30, %v1240_v23  ;;  %vm1254_vm7 = vmor %vm1252_vm6, %vm1253_vm5  ;;  %v1273_v20 = vand.u32 2147483648, %v1134_v29  ;;  %v1271_v57 = vand.u32 2147483647, %v1134_v29 }
 0x31d   :  { %1931 = vmatmul.msk.f32.gmra.mxu1 %vm1386_vm4, %v1245_v34  ;;  %1947 = vmatmul.msk.f32.gmra.mxu2 %vm1386_vm4, %v1245_v34  ;;  %v1249_v59 = vsub.f32 1.0, %v1248_v32  ;;  %vm1267_vm10 = vweird.f32 %v1134_v29 }
 0x31e   :  { %v1060_v35 = vpop.f32.mrf.mxu2  ;;  %v1274_v19 = vor.u32 1.1754944e-38, %v1273_v20  ;;  %vm1272_vm0 = vcmp.eq.f32.partialorder %v1271_v57, 8.507059e+37 }
 0x31f   :  { %v1061_v40 = vadd.f32 %v1060_v35, %v2742_v5  ;;  %v1250_v42 = vmul.f32 %v2076_v28, %v1249_v59 }
 0x321   :  { %v2078_v46 = vpop.eup %2077  ;;  %v1887_v47 = vmul.f32 -1.442695, %v1061_v40  ;;  %v1251_v39 = vadd.f32 %v2076_v28, %v1250_v42 }
 0x322   :  { %v2080_v45 = vpop.eup %2079  ;;  %v2896_v48 = vadd.f32 1.0, %v2078_v46 }
 0x323   :  { %2081 = vpow2.f32 %v1887_v47  ;;  %v1255_v50 = vsel %vm1254_vm7, %v2076_v28, %v1251_v39  ;;  %v1263_v52 = vmul.f32 %v2080_v45, %v1134_v29  ;;  %vm1268_vm9 = vweird.f32 %v2080_v45 }
 0x324   :  { %2083 = vrcp.f32 %v2896_v48  ;;  %v1260_v5 = vsel %vm1257_vm8, %v1259_v49, %v1255_v50  ;;  %vm1269_vm11 = vmor %vm1267_vm10, %vm1268_vm9  ;;  %v1288_v4 = vand.u32 2147483648, %v2896_v48  ;;  %v1286_v3 = vand.u32 2147483647, %v2896_v48 }
 0x325   :  { %1932 = vmatmul.msk.f32.gmra.mxu1 %vm1386_vm4, %v1260_v5  ;;  %1948 = vmatmul.msk.f32.gmra.mxu2 %vm1386_vm4, %v1260_v5  ;;  %v1264_v25 = vsub.f32 1.0, %v1263_v52  ;;  %2085 = vpow2.f32 %v1890_v54  ;;  %vm1282_vm13 = vweird.f32 %v2896_v48  ;;  %v1892_v29 = vmul.f32 -1.442695, %v1076_v41 }
 0x326   :  { %v1063_v55 = vpop.f32.mrf.mxu2  ;;  %v1289_v6 = vor.u32 1.1754944e-38, %v1288_v4  ;;  %vm1287_vm15 = vcmp.eq.f32.partialorder %v1286_v3, 8.507059e+37  ;;  %v1517_v3 = vpop.f32.mrf.mxu0 }
 0x327   :  { %v1064_v53 = vadd.f32 %v1063_v55, %v2746_v37  ;;  %v1265_v56 = vmul.f32 %v2080_v45, %v1264_v25 }
 0x329   :  { %v2082_v60 = vpop.eup %2081  ;;  %v1888_v62 = vmul.f32 -1.442695, %v1064_v53  ;;  %v1266_v63 = vadd.f32 %v2080_v45, %v1265_v56 }
 0x32a   :  { %v2084_v33 = vpop.eup %2083  ;;  %v1136_v15 = vadd.f32 1.0, %v2082_v60 }
 0x32b   :  { %2087 = vpow2.f32 %v1888_v62  ;;  %v1270_v17 = vsel %vm1269_vm11, %v2080_v45, %v1266_v63  ;;  %v1278_v12 = vmul.f32 %v2084_v33, %v2896_v48  ;;  %vm1283_vm12 = vweird.f32 %v2084_v33  ;;  %v2086_v11 = vpop.eup %2085 }
 0x32c   :  { %2089 = vrcp.f32 %v1136_v15  ;;  %v1275_v37 = vsel %vm1272_vm0, %v1274_v19, %v1270_v17  ;;  %vm1284_vm14 = vmor %vm1282_vm13, %vm1283_vm12  ;;  %v2909_v24 = vadd.f32 1.0, %v2086_v11  ;;  %v1303_v28 = vand.u32 2147483648, %v1136_v15  ;;  %v1452_v17 = vpop.f32.mrf.mxu3 }
 0x32d   :  { %1933 = vmatmul.msk.f32.gmra.mxu1 %vm1386_vm4, %v1275_v37  ;;  %1949 = vmatmul.msk.f32.gmra.mxu2 %vm1386_vm4, %v1275_v37  ;;  %v1279_v10 = vsub.f32 1.0, %v1278_v12  ;;  %2091 = vpow2.f32 %v1891_v8  ;;  %v1301_v31 = vand.u32 2147483647, %v1136_v15  ;;  %vm1297_vm2 = vweird.f32 %v1136_v15 }
 0x32e   :  { %v1066_v7 = vpop.f32.mrf.mxu2  ;;  %v1304_v38 = vor.u32 1.1754944e-38, %v1303_v28  ;;  %v1346_v4 = vand.u32 2147483647, %v2909_v24 }
 0x32f   :  { %v1067_v1 = vadd.f32 %v1066_v7, %v2753_v58  ;;  %v1280_v2 = vmul.f32 %v2084_v33, %v1279_v10  ;;  %vm1302_vm5 = vcmp.eq.f32.partialorder %v1301_v31, 8.507059e+37  ;;  %v1348_v7 = vand.u32 2147483648, %v2909_v24 }
 0x331   :  { %v2088_v13 = vpop.eup %2087  ;;  %v1889_v9 = vmul.f32 -1.442695, %v1067_v1  ;;  %v1281_v36 = vadd.f32 %v2084_v33, %v1280_v2  ;;  %v1349_v11 = vor.u32 1.1754944e-38, %v1348_v7 }
 0x332   :  { %v2090_v21 = vpop.eup %2089  ;;  %v1137_v22 = vadd.f32 1.0, %v2088_v13 }
 0x333   :  { %2093 = vpow2.f32 %v1889_v9  ;;  %v1285_v43 = vsel %vm1284_vm14, %v2084_v33, %v1281_v36  ;;  %v1293_v58 = vmul.f32 %v2090_v21, %v1136_v15  ;;  %vm1298_vm1 = vweird.f32 %v2090_v21  ;;  %v2092_v23 = vpop.eup %2091 }
 0x334   :  { %2095 = vrcp.f32 %v1137_v22  ;;  %v1290_v26 = vsel %vm1287_vm15, %v1289_v6, %v1285_v43  ;;  %vm1299_vm3 = vmor %vm1297_vm2, %vm1298_vm1  ;;  %v2914_v44 = vadd.f32 1.0, %v2092_v23  ;;  %v1318_v45 = vand.u32 2147483648, %v1137_v22  ;;  %v1455_v36 = vpop.f32.mrf.mxu3 }
 0x335   :  { %1934 = vmatmul.msk.f32.gmra.mxu1 %vm1386_vm4, %v1290_v26  ;;  %1950 = vmatmul.msk.f32.gmra.mxu2 %vm1386_vm4, %v1290_v26  ;;  %v1294_v27 = vsub.f32 1.0, %v1293_v58  ;;  %2097 = vrcp.f32 %v2909_v24  ;;  %v1316_v48 = vand.u32 2147483647, %v1137_v22  ;;  %vm1312_vm7 = vweird.f32 %v1137_v22  ;;  %v1520_v58 = vpop.f32.mrf.mxu0 }
 0x336   :  { %2099 = vpow2.f32 %v1892_v29  ;;  %v1319_v51 = vor.u32 1.1754944e-38, %v1318_v45  ;;  %vm1342_vm14 = vweird.f32 %v2909_v24  ;;  %vm1347_vm1 = vcmp.eq.f32.partialorder %v1346_v4, 8.507059e+37 }
 0x337   :  { %v1295_v30 = vmul.f32 %v2090_v21, %v1294_v27  ;;  %vm1317_vm9 = vcmp.eq.f32.partialorder %v1316_v48, 8.507059e+37  ;;  %v1361_v41 = vand.u32 2147483647, %v2914_v44 }
 0x339   :  { %v2094_v32 = vpop.eup %2093  ;;  %v1296_v34 = vadd.f32 %v2090_v21, %v1295_v30 }
 0x33a   :  { %v2096_v59 = vpop.eup %2095  ;;  %v1138_v35 = vadd.f32 1.0, %v2094_v32 }
 0x33b   :  { %v1300_v40 = vsel %vm1299_vm3, %v2090_v21, %v1296_v34  ;;  %v1308_v42 = vmul.f32 %v2096_v59, %v1137_v22  ;;  %v2098_v39 = vpop.eup %2097  ;;  %vm1313_vm6 = vweird.f32 %v2096_v59  ;;  %v1363_v21 = vand.u32 2147483648, %v2914_v44 }
 0x33c   :  { %2101 = vrcp.f32 %v1138_v35  ;;  %v1305_v46 = vsel %vm1302_vm5, %v1304_v38, %v1300_v40  ;;  %v2100_v49 = vpop.eup %2099  ;;  %v1338_v52 = vmul.f32 %v2098_v39, %v2909_v24  ;;  %vm1314_vm8 = vmor %vm1312_vm7, %vm1313_vm6  ;;  %v1333_v60 = vand.u32 2147483648, %v1138_v35  ;;  %v1458_v29 = vpop.f32.mrf.mxu3 }
 0x33d   :  { %1935 = vmatmul.msk.f32.gmra.mxu1 %vm1386_vm4, %v1305_v46  ;;  %1951 = vmatmul.msk.f32.gmra.mxu2 %vm1386_vm4, %v1305_v46  ;;  %v1309_v47 = vsub.f32 1.0, %v1308_v42  ;;  %2103 = vrcp.f32 %v2914_v44  ;;  %v2920_v55 = vadd.f32 1.0, %v2100_v49  ;;  %v1331_v62 = vand.u32 2147483647, %v1138_v35  ;;  %v1523_v32 = vpop.f32.mrf.mxu0 }
 0x33e   :  { %v1339_v56 = vsub.f32 1.0, %v1338_v52  ;;  %vm1327_vm11 = vweird.f32 %v1138_v35  ;;  %v1334_v15 = vor.u32 1.1754944e-38, %v1333_v60  ;;  %vm1343_vm13 = vweird.f32 %v2098_v39 }
 0x33f   :  { %v1310_v16 = vmul.f32 %v2096_v59, %v1309_v47  ;;  %2105 = vrcp.f32 %v2920_v55  ;;  %vm1332_vm12 = vcmp.eq.f32.partialorder %v1331_v62, 8.507059e+37  ;;  %vm1344_vm15 = vmor %vm1342_vm14, %vm1343_vm13  ;;  %vm1357_vm3 = vweird.f32 %v2914_v44 }
 0x340   :  { %v1340_v33 = vmul.f32 %v2098_v39, %v1339_v56  ;;  %v1364_v43 = vor.u32 1.1754944e-38, %v1363_v21  ;;  %vm1362_vm6 = vcmp.eq.f32.partialorder %v1361_v41, 8.507059e+37  ;;  %v1378_v27 = vand.u32 2147483648, %v2920_v55 }
 0x341   :  { %v1311_v50 = vadd.f32 %v2096_v59, %v1310_v16  ;;  %v1376_v28 = vand.u32 2147483647, %v2920_v55 }
 0x342   :  { %v2102_v5 = vpop.eup %2101  ;;  %v1341_v37 = vadd.f32 %v2098_v39, %v1340_v33  ;;  %v1379_v31 = vor.u32 1.1754944e-38, %v1378_v27 }
 0x343   :  { %v1315_v25 = vsel %vm1314_vm8, %v2096_v59, %v1311_v50  ;;  %v1323_v54 = vmul.f32 %v2102_v5, %v1138_v35  ;;  %v2104_v57 = vpop.eup %2103  ;;  %vm1328_vm10 = vweird.f32 %v2102_v5  ;;  %vm1372_vm8 = vweird.f32 %v2920_v55 }
 0x344   :  { %v1320_v20 = vsel %vm1317_vm9, %v1319_v51, %v1315_v25  ;;  %v1353_v14 = vmul.f32 %v2104_v57, %v2914_v44  ;;  %vm1329_vm0 = vmor %vm1327_vm11, %vm1328_vm10  ;;  %v1345_v0 = vsel %vm1344_vm15, %v2098_v39, %v1341_v37  ;;  %vm1358_vm2 = vweird.f32 %v2104_v57  ;;  %v1461_v34 = vpop.f32.mrf.mxu3 }
 0x345   :  { %1936 = vmatmul.msk.f32.gmra.mxu1 %vm1386_vm4, %v1320_v20  ;;  %1952 = vmatmul.msk.f32.gmra.mxu2 %vm1386_vm4, %v1320_v20  ;;  %v1324_v53 = vsub.f32 1.0, %v1323_v54  ;;  %v2106_v8 = vpop.eup %2105  ;;  %v1350_v13 = vsel %vm1347_vm1, %v1349_v11, %v1345_v0  ;;  %vm1359_vm5 = vmor %vm1357_vm3, %vm1358_vm2  ;;  %vm1377_vm10 = vcmp.eq.f32.partialorder %v1376_v28, 8.507059e+37  ;;  %v1526_v38 = vpop.f32.mrf.mxu0 }
 0x346   :  { %v1354_v10 = vsub.f32 1.0, %v1353_v14  ;;  %v1368_v2 = vmul.f32 %v2106_v8, %v2920_v55  ;;  %vm1373_vm7 = vweird.f32 %v2106_v8 }
 0x347   :  { %v1325_v61 = vmul.f32 %v2102_v5, %v1324_v53  ;;  %vm1374_vm9 = vmor %vm1372_vm8, %vm1373_vm7 }
 0x348   :  { %v1355_v1 = vmul.f32 %v2104_v57, %v1354_v10  ;;  %v1369_v9 = vsub.f32 1.0, %v1368_v2 }
 0x349   :  { %v1326_v63 = vadd.f32 %v2102_v5, %v1325_v61 }
 0x34a   :  { %v1356_v18 = vadd.f32 %v2104_v57, %v1355_v1  ;;  %v1370_v6 = vmul.f32 %v2106_v8, %v1369_v9 }
 0x34b   :  { %v1330_v19 = vsel %vm1329_vm0, %v2102_v5, %v1326_v63 }
 0x34c   :  { %v1335_v12 = vsel %vm1332_vm12, %v1334_v15, %v1330_v19  ;;  %v1360_v22 = vsel %vm1359_vm5, %v2104_v57, %v1356_v18  ;;  %v1371_v26 = vadd.f32 %v2106_v8, %v1370_v6  ;;  %v1464_v47 = vpop.f32.mrf.mxu3 }
 0x34d   :  { %1937 = vmatmul.msk.f32.gmra.mxu1 %vm1386_vm4, %v1335_v12  ;;  %1953 = vmatmul.msk.f32.gmra.mxu2 %vm1386_vm4, %v1335_v12  ;;  %v1365_v24 = vsel %vm1362_vm6, %v1364_v43, %v1360_v22  ;;  %v1529_v16 = vpop.f32.mrf.mxu0 }
 0x34e   :  { %v1375_v30 = vsel %vm1374_vm9, %v2106_v8, %v1371_v26 }
 0x34f   :  { %v1380_v23 = vsel %vm1377_vm10, %v1379_v31, %v1375_v30 }
 0x354   :  { %v1467_v50 = vpop.f32.mrf.mxu3 }
 0x355   :  { %1938 = vmatmul.msk.f32.gmra.mxu1 %vm1386_vm4, %v1350_v13  ;;  %1954 = vmatmul.msk.f32.gmra.mxu2 %vm1386_vm4, %v1350_v13  ;;  %v1532_v54 = vpop.f32.mrf.mxu0 }
 0x35c   :  { %v1470_v55 = vpop.f32.mrf.mxu3 }
 0x35d   :  { %1939 = vmatmul.msk.f32.gmra.mxu1 %vm1386_vm4, %v1365_v24  ;;  %1955 = vmatmul.msk.f32.gmra.mxu2 %vm1386_vm4, %v1365_v24  ;;  %v1535_v60 = vpop.f32.mrf.mxu0 }
 0x364   :  { %v1473_v63 = vpop.f32.mrf.mxu3 }
 0x365   :  { %1940 = vmatmul.msk.f32.gmra.mxu1 %vm1386_vm4, %v1380_v23  ;;  %1956 = vmatmul.msk.f32.gmra.mxu2 %vm1386_vm4, %v1380_v23  ;;  %v1538_v15 = vpop.f32.mrf.mxu0 }
 0x36a   :  { %v1634_v59 = vpop.f32.mrf.mxu1 }
 0x36b   :  { %v1747_v35 = vmul.f32 %v1634_v59, %v1452_v17 }
 0x36c   :  { %v1476_v10 = vpop.f32.mrf.mxu3 }
 0x36d   :  { %1779 = vst [vmem:[#allocation2] sm:$0xff] %v1747_v35  ;;  %v1541_v4 = vpop.f32.mrf.mxu0 }
 0x370   :  { %v1699_v40 = vpop.f32.mrf.mxu2 }
 0x371   :  { %v1748_v42 = vmul.f32 %v1699_v40, %v1517_v3 }
 0x372   :  { %v1637_v44 = vpop.f32.mrf.mxu1 }
 0x373   :  { %1780 = vst [vmem:[#allocation2 + $0x8] sm:$0xff] %v1748_v42  ;;  %v1749_v46 = vmul.f32 %v1637_v44, %v1455_v36 }
 0x374   :  { %v1479_v2 = vpop.f32.mrf.mxu3 }
 0x375   :  { %1781 = vst [vmem:[#allocation2 + $0x10] sm:$0xff] %v1749_v46  ;;  %v1544_v9 = vpop.f32.mrf.mxu0 }
 0x378   :  { %v1702_v39 = vpop.f32.mrf.mxu2 }
 0x379   :  { %v1750_v45 = vmul.f32 %v1702_v39, %v1520_v58 }
 0x37a   :  { %v1640_v48 = vpop.f32.mrf.mxu1 }
 0x37b   :  { %1782 = vst [vmem:[#allocation2 + $0x18] sm:$0xff] %v1750_v45  ;;  %v1751_v49 = vmul.f32 %v1640_v48, %v1458_v29 }
 0x37c   :  { %v1482_v36 = vpop.f32.mrf.mxu3 }
 0x37d   :  { %1783 = vst [vmem:[#allocation2 + $0x20] sm:$0xff] %v1751_v49  ;;  %v1547_v43 = vpop.f32.mrf.mxu0 }
 0x380   :  { %v1705_v52 = vpop.f32.mrf.mxu2 }
 0x381   :  { %v1752_v5 = vmul.f32 %v1705_v52, %v1523_v32 }
 0x382   :  { %v1643_v51 = vpop.f32.mrf.mxu1 }
 0x383   :  { %1784 = vst [vmem:[#allocation2 + $0x28] sm:$0xff] %v1752_v5  ;;  %v1753_v25 = vmul.f32 %v1643_v51, %v1461_v34 }
 0x384   :  { %v1485_v26 = vpop.f32.mrf.mxu3 }
 0x385   :  { %1785 = vst [vmem:[#allocation2 + $0x30] sm:$0xff] %v1753_v25  ;;  %v1550_v29 = vpop.f32.mrf.mxu0 }
 0x388   :  { %v1708_v20 = vpop.f32.mrf.mxu2 }
 0x389   :  { %v1754_v53 = vmul.f32 %v1708_v20, %v1526_v38 }
 0x38a   :  { %v1646_v56 = vpop.f32.mrf.mxu1 }
 0x38b   :  { %1786 = vst [vmem:[#allocation2 + $0x38] sm:$0xff] %v1754_v53  ;;  %v1755_v57 = vmul.f32 %v1646_v56, %v1464_v47 }
 0x38c   :  { %v1488_v34 = vpop.f32.mrf.mxu3 }
 0x38d   :  { %1787 = vst [vmem:[#allocation2 + $0x40] sm:$0xff] %v1755_v57  ;;  %v1553_v38 = vpop.f32.mrf.mxu0 }
 0x390   :  { %v1711_v61 = vpop.f32.mrf.mxu2 }
 0x391   :  { %v1756_v62 = vmul.f32 %v1711_v61, %v1529_v16 }
 0x392   :  { %v1649_v33 = vpop.f32.mrf.mxu1 }
 0x393   :  { %1788 = vst [vmem:[#allocation2 + $0x48] sm:$0xff] %v1756_v62  ;;  %v1757_v14 = vmul.f32 %v1649_v33, %v1467_v50 }
 0x394   :  { %v1491_v44 = vpop.f32.mrf.mxu3 }
 0x395   :  { %1789 = vst [vmem:[#allocation2 + $0x50] sm:$0xff] %v1757_v14  ;;  %v1556_v16 = vpop.f32.mrf.mxu0 }
 0x398   :  { %v1714_v19 = vpop.f32.mrf.mxu2 }
 0x399   :  { %v1758_v17 = vmul.f32 %v1714_v19, %v1532_v54 }
 0x39a   :  { %v1652_v12 = vpop.f32.mrf.mxu1 }
 0x39b   :  { %1790 = vst [vmem:[#allocation2 + $0x58] sm:$0xff] %v1758_v17  ;;  %v1759_v37 = vmul.f32 %v1652_v12, %v1470_v55 }
 0x39c   :  { %v1494_v48 = vpop.f32.mrf.mxu3 }
 0x39d   :  { %1791 = vst [vmem:[#allocation2 + $0x60] sm:$0xff] %v1759_v37  ;;  %v1559_v51 = vpop.f32.mrf.mxu0 }
 0x3a0   :  { %v1717_v8 = vpop.f32.mrf.mxu2 }
 0x3a1   :  { %v1760_v7 = vmul.f32 %v1717_v8, %v1535_v60 }
 0x3a2   :  { %v1655_v0 = vpop.f32.mrf.mxu1 }
 0x3a3   :  { %1792 = vst [vmem:[#allocation2 + $0x68] sm:$0xff] %v1760_v7  ;;  %v1761_v1 = vmul.f32 %v1655_v0, %v1473_v63 }
 0x3a4   :  { %v1497_v55 = vpop.f32.mrf.mxu3 }
 0x3a5   :  { %1793 = vst [vmem:[#allocation2 + $0x70] sm:$0xff] %v1761_v1  ;;  %v1562_v56 = vpop.f32.mrf.mxu0 }
 0x3a8   :  { %v1720_v3 = vpop.f32.mrf.mxu2 }
 0x3a9   :  { %v1762_v11 = vmul.f32 %v1720_v3, %v1538_v15 }
 0x3aa   :  { %v1658_v13 = vpop.f32.mrf.mxu1 }
 0x3ab   :  { %1794 = vst [vmem:[#allocation2 + $0x78] sm:$0xff] %v1762_v11  ;;  %v1763_v18 = vmul.f32 %v1658_v13, %v1476_v10 }
 0x3ad   :  { %1795 = vst [vmem:[#allocation2 + $0x80] sm:$0xff] %v1763_v18 }
 0x3b0   :  { %v1723_v21 = vpop.f32.mrf.mxu2 }
 0x3b1   :  { %v1764_v41 = vmul.f32 %v1723_v21, %v1541_v4 }
 0x3b2   :  { %v1661_v22 = vpop.f32.mrf.mxu1 }
 0x3b3   :  { %1796 = vst [vmem:[#allocation2 + $0x88] sm:$0xff] %v1764_v41  ;;  %v1765_v6 = vmul.f32 %v1661_v22, %v1479_v2 }
 0x3b5   :  { %1797 = vst [vmem:[#allocation2 + $0x90] sm:$0xff] %v1765_v6 }
 0x3b8   :  { %v1726_v58 = vpop.f32.mrf.mxu2 }
 0x3b9   :  { %v1766_v24 = vmul.f32 %v1726_v58, %v1544_v9 }
 0x3ba   :  { %v1664_v27 = vpop.f32.mrf.mxu1 }
 0x3bb   :  { %1798 = vst [vmem:[#allocation2 + $0x98] sm:$0xff] %v1766_v24  ;;  %v1767_v28 = vmul.f32 %v1664_v27, %v1482_v36 }
 0x3bd   :  { %1799 = vst [vmem:[#allocation2 + $0xa0] sm:$0xff] %v1767_v28 }
 0x3c0   :  { %v1729_v30 = vpop.f32.mrf.mxu2 }
 0x3c1   :  { %v1768_v31 = vmul.f32 %v1729_v30, %v1547_v43 }
 0x3c2   :  { %v1667_v23 = vpop.f32.mrf.mxu1 }
 0x3c3   :  { %1800 = vst [vmem:[#allocation2 + $0xa8] sm:$0xff] %v1768_v31  ;;  %v1769_v32 = vmul.f32 %v1667_v23, %v1485_v26 }
 0x3c5   :  { %1801 = vst [vmem:[#allocation2 + $0xb0] sm:$0xff] %v1769_v32 }
 0x3c8   :  { %v1732_v59 = vpop.f32.mrf.mxu2 }
 0x3c9   :  { %v1770_v35 = vmul.f32 %v1732_v59, %v1550_v29 }
 0x3ca   :  { %v1670_v40 = vpop.f32.mrf.mxu1 }
 0x3cb   :  { %1802 = vst [vmem:[#allocation2 + $0xb8] sm:$0xff] %v1770_v35  ;;  %v1771_v42 = vmul.f32 %v1670_v40, %v1488_v34 }
 0x3cd   :  { %1803 = vst [vmem:[#allocation2 + $0xc0] sm:$0xff] %v1771_v42 }
 0x3d0   :  { %v1735_v46 = vpop.f32.mrf.mxu2 }
 0x3d1   :  { %v1772_v47 = vmul.f32 %v1735_v46, %v1553_v38 }
 0x3d2   :  { %v1673_v39 = vpop.f32.mrf.mxu1 }
 0x3d3   :  { %1804 = vst [vmem:[#allocation2 + $0xc8] sm:$0xff] %v1772_v47  ;;  %v1773_v45 = vmul.f32 %v1673_v39, %v1491_v44 }
 0x3d5   :  { %1805 = vst [vmem:[#allocation2 + $0xd0] sm:$0xff] %v1773_v45 }
 0x3d8   :  { %v1738_v49 = vpop.f32.mrf.mxu2 }
 0x3d9   :  { %v1774_v50 = vmul.f32 %v1738_v49, %v1556_v16 }
 0x3da   :  { %v1676_v52 = vpop.f32.mrf.mxu1 }
 0x3db   :  { %1806 = vst [vmem:[#allocation2 + $0xd8] sm:$0xff] %v1774_v50  ;;  %v1775_v5 = vmul.f32 %v1676_v52, %v1494_v48 }
 0x3dd   :  { %1807 = vst [vmem:[#allocation2 + $0xe0] sm:$0xff] %v1775_v5 }
 0x3e0   :  { %v1741_v25 = vpop.f32.mrf.mxu2 }
 0x3e1   :  { %v1776_v54 = vmul.f32 %v1741_v25, %v1559_v51 }
 0x3e2   :  { %v1679_v20 = vpop.f32.mrf.mxu1 }
 0x3e3   :  { %1808 = vst [vmem:[#allocation2 + $0xe8] sm:$0xff] %v1776_v54  ;;  %v1777_v53 = vmul.f32 %v1679_v20, %v1497_v55 }
 0x3e5   :  { %1809 = vst [vmem:[#allocation2 + $0xf0] sm:$0xff] %v1777_v53 }
 0x3e8   :  { %v1744_v57 = vpop.f32.mrf.mxu2 }
 0x3e9   :  { %v1778_v60 = vmul.f32 %v1744_v57, %v1562_v56 }
 0x3eb   :  { %1810 = vst [vmem:[#allocation2 + $0xf8] sm:$0xff] %v1778_v60 }
 0x3ec   :  { %1823 = dma.vmem_to_hbm [thread:$0]  %s1816_s27, 4096, %s1818_s4, [#allocation3], %s2136_s30, %s2136_s30, %s2137_s2  }
 0x3ed   :  { %2131 = dma.done.wait [#allocation3], 4096  }
 0x3ee   :  { %2132 = vsyncadd [#allocation3], 4294963200 }
 0x3ef   :  { %1828 = vsyncpa [#allocation3], 1 }

</bundles_post_ra>
